<compile_context>
chip_gen: v7x
topology: tpu7x:2x2x1
jax: 0.10.0
libtpu: 0.0.40
codegen_flags: <defaults>
</compile_context>

<pallas_src>
import numpy as np
import jax
import jax.numpy as jnp
from jax import lax
from jax.experimental import pallas as pl
from jax.experimental.pallas import tpu as pltpu


def _make_kernel(H, W, S, B, C_in, C_mid, C_out, mxu_dtype):
    Wp = W + 2
    TOT = B * S
    inv_hw = 1.0 / float(H * W)
    # Tap order (ky row-major over kx) matches the host weight reshape.
    tap_offsets = tuple(dy * Wp + dx for dy in (-1, 0, 1) for dx in (-1, 0, 1))

    # shifted(v, d)[:, p] == v[:, p + d] (cyclically).  The wrap-around is
    # harmless: (a) conv taps (|d| <= Wp+1) read from interior lanes only
    # lanes of the *same* padded image (its zero ring / zero pad), never
    # wrapping past the slab ends; (b) pool shifts (d in {1, Wp, Wp+1}) at the
    # host-gathered lanes (1+2oh, 1+2ow) read only interior lanes of the same
    # image.  Every other lane is either multiplied by the interior mask or
    # never consumed by the host-side gather.
    def shifted(v, d):
        if d == 0:
            return v
        return pltpu.roll(v, (-d) % TOT, axis=1)

    def conv3x3(v, w_ref):
        # One fused GEMM per layer: stack the 9 rolled slabs along K (sublanes)
        # and contract against the (Cout, 9*Cin) weights on the MXU.
        stacked = jnp.concatenate([shifted(v, d) for d in tap_offsets], axis=0)
        return jnp.dot(w_ref[...], stacked.astype(mxu_dtype),
                       preferred_element_type=jnp.float32)

    def kernel(x_ref, w1_ref, bn1s_ref, bn1b_ref,
               w2_ref, bn2s_ref, bn2b_ref,
               w3_ref, b3_ref,
               fc1w_ref, fc1b_ref, fc2w_ref, fc2b_ref,
               mask_ref, out_ref):
        mask1 = mask_ref[...]                                   # (1, TOT)
        mask_mid = jnp.broadcast_to(mask1, (C_mid, TOT))         # broadcast once

        v0 = x_ref[0]                                            # (C_in, TOT)

        # ---- conv1 -> relu1 -> bn1  (dropout1 = identity at inference) ----
        z1 = conv3x3(v0, w1_ref)
        v1 = (jnp.maximum(z1, 0.0) * bn1s_ref[...] + bn1b_ref[...]) * mask_mid

        # ---- conv2 -> relu2 -> bn2  (dropout2 = identity) ----
        z2 = conv3x3(v1, w2_ref)
        v2 = (jnp.maximum(z2, 0.0) * bn2s_ref[...] + bn2b_ref[...]) * mask_mid

        # ---- conv3 (with bias) -> relu3 ----
        ident = jnp.maximum(conv3x3(v2, w3_ref) + b3_ref[...], 0.0)  # (C_out, TOT)

        # ---- PLV pooling: per-image fraction of pixels with (act - bias) > 0.
        # pos is consumed immediately (bounded live range).
        pos = jnp.where(ident - b3_ref[...] > 0.0, 1.0, 0.0) * mask1
        se = pos.reshape(C_out, B, S).sum(axis=-1) * inv_hw          # (C_out, B)

        # ---- SE MLP: fc1 -> fc2 (no activation between them, per the module)
        hmid = jnp.dot(fc1w_ref[...], se,
                       preferred_element_type=jnp.float32) + fc1b_ref[...]
        sc = jnp.dot(fc2w_ref[...], hmid,
                     preferred_element_type=jnp.float32) + fc2b_ref[...]  # (C_out, B)
        s_full = jnp.broadcast_to(sc[:, :, None], (C_out, B, S)).reshape(C_out, TOT)

        # ---- channel-wise scale + 2x2 average pool (3 rolled VPU adds) ----
        # Host gathers only lanes (1+2oh, 1+2ow); all four summands at those
        # lanes are interior values, so wrap/border lanes never leak.
        scaled = ident * s_full
        s4 = (scaled + shifted(scaled, 1)
              + shifted(scaled, Wp) + shifted(scaled, Wp + 1))
        out_ref[0] = 0.25 * s4
        # dropout3 = identity at inference

    return kernel


def feature_block_forward(x_nchw, params, *, planes, divn=4, block_b=32,
                          mxu_dtype=jnp.bfloat16):
    """Pallas implementation of FeatureBlock.forward.  x_nchw: (N, C_in, H, W)."""
    N, C_in, H, W = x_nchw.shape
    assert H % 2 == 0 and W % 2 == 0, "AvgPool2d(2) needs even H and W"
    C_mid, C_out = planes // 2, planes
    Wp = W + 2
    img = (H + 2) * Wp                              # padded image, flattened
    S = ((img + 127) // 128) * 128                  # per-image lane stride (x128)
    assert S % 128 == 0 and S >= img

    # Images per grid step.  Keep >= 2 grid steps when N > 1 so the "parallel"
    # batch axis can be sharded across both v7x TensorCores.
    B = max(1, min(block_b, N))
    NB = -(-N // B)
    if N > 1 and NB < 2:
        B = -(-N // 2)
        NB = -(-N // B)
    N_pad = NB * B
    TOT = B * S

    # ---- host glue: NCHW -> per-image padded slabs lane-stacked in blocks ----
    x = x_nchw.astype(jnp.float32)
    if N_pad != N:
        x = jnp.concatenate(
            [x, jnp.zeros((N_pad - N, C_in, H, W), jnp.float32)], axis=0)
    xp = jnp.pad(x, ((0, 0), (0, 0), (1, 1), (1, 1))).reshape(N_pad, C_in, img)
    xp = jnp.pad(xp, ((0, 0), (0, 0), (0, S - img)))
    x_lanes = xp.reshape(NB, B, C_in, S).transpose(0, 2, 1, 3).reshape(NB, C_in, TOT)

    # interior-pixel mask, tiled per lane-stacked image
    m = np.zeros((H + 2, Wp), np.float32)
    m[1:H + 1, 1:W + 1] = 1.0
    m = np.pad(m.reshape(-1), (0, S - img))
    mask = jnp.asarray(np.tile(m, B)[None, :])                      # (1, TOT)

    # weights: HWIO (3,3,Cin,Cout) -> (Cout, 9*Cin), tap-major K; bf16 for MXU
    def conv_w(w_hwio):
        co = w_hwio.shape[3]
        return jnp.transpose(w_hwio, (3, 0, 1, 2)).reshape(co, -1).astype(mxu_dtype)

    eps = 1e-5
    w1, w2, w3 = conv_w(params['w1']), conv_w(params['w2']), conv_w(params['w3'])
    b3 = params['b3'][:, None].astype(jnp.float32)
    bn1s1 = params['bn1_gamma'] / jnp.sqrt(params['bn1_var'] + eps)
    bn1b = (params['bn1_beta'] - params['bn1_mean'] * bn1s1)[:, None]
    bn1s = bn1s1[:, None]
    bn2s1 = params['bn2_gamma'] / jnp.sqrt(params['bn2_var'] + eps)
    bn2b = (params['bn2_beta'] - params['bn2_mean'] * bn2s1)[:, None]
    bn2s = bn2s1[:, None]
    fc1wT = params['fc1_w'].T.astype(jnp.float32)   # (C_hid, C_out)
    fc1b = params['fc1_b'][:, None]
    fc2wT = params['fc2_w'].T.astype(jnp.float32)   # (C_out, C_hid)
    fc2b = params['fc2_b'][:, None]

    kernel = _make_kernel(H, W, S, B, C_in, C_mid, C_out, mxu_dtype)

    def full(a):
        nd = a.ndim
        return pl.BlockSpec(a.shape, lambda n, nd=nd: (0,) * nd)

    grid_spec = pltpu.PrefetchScalarGridSpec(
        num_scalar_prefetch=0,
        grid=(NB,),
        in_specs=[
            pl.BlockSpec((1, C_in, TOT), lambda n: (n, 0, 0)),
            full(w1), full(bn1s), full(bn1b),
            full(w2), full(bn2s), full(bn2b),
            full(w3), full(b3),
            full(fc1wT), full(fc1b), full(fc2wT), full(fc2b),
            full(mask),
        ],
        out_specs=pl.BlockSpec((1, C_out, TOT), lambda n: (n, 0, 0)),
    )

    out = pl.pallas_call(
        kernel,
        out_shape=jax.ShapeDtypeStruct((NB, C_out, TOT), jnp.float32),
        grid_spec=grid_spec,
        compiler_params=pltpu.CompilerParams(
            dimension_semantics=("parallel",),
            vmem_limit_bytes=32 * 1024 * 1024),
    )(x_lanes, w1, bn1s, bn1b, w2, bn2s, bn2b, w3, b3,
      fc1wT, fc1b, fc2wT, fc2b, mask)

    # un-stack the lane-batched, lane-dense output and gather the pooled pixels
    out = out.reshape(NB, C_out, B, S).transpose(0, 2, 1, 3).reshape(N_pad, C_out, S)
    out = out[:N, :, :img].reshape(N, C_out, H + 2, Wp)
    return out[:, :, 1:H + 1:2, 1:W + 1:2]          # (N, C_out, H//2, W//2), NCHW


def feature_block_reference(x_nchw, params, *, planes, divn=4):
    """Pure-JAX reference (inference semantics), for validation."""
    eps = 1e-5
    x = jnp.transpose(x_nchw, (0, 2, 3, 1)).astype(jnp.float32)   # NHWC

    def conv(z, w):
        return lax.conv_general_dilated(
            z, w, (1, 1), 'SAME',
            dimension_numbers=('NHWC', 'HWIO', 'NHWC'),
            precision=lax.Precision.HIGHEST)

    def bn(z, g, b, m, v):
        return (z - m) / jnp.sqrt(v + eps) * g + b

    o = jax.nn.relu(conv(x, params['w1']))
    o = bn(o, params['bn1_gamma'], params['bn1_beta'], params['bn1_mean'], params['bn1_var'])
    o = jax.nn.relu(conv(o, params['w2']))
    o = bn(o, params['bn2_gamma'], params['bn2_beta'], params['bn2_mean'], params['bn2_var'])
    o = jax.nn.relu(conv(o, params['w3']) + params['b3'])
    identity = o
    se = jnp.mean((o - params['b3'] > 0).astype(jnp.float32), axis=(1, 2))   # PLV pooling
    se = jnp.dot(se, params['fc1_w'], precision=lax.Precision.HIGHEST) + params['fc1_b']
    se = jnp.dot(se, params['fc2_w'], precision=lax.Precision.HIGHEST) + params['fc2_b']
    o = identity * se[:, None, None, :]
    N, H, W, C = o.shape
    o = o.reshape(N, H // 2, 2, W // 2, 2, C).mean(axis=(2, 4))              # AvgPool2d(2)
    return jnp.transpose(o, (0, 3, 1, 2))                                    # NCHW


if __name__ == "__main__":
    N, inplanes, planes, divn = 2, 4, 8, 4
    H = W = 16
    C_mid, C_hid = planes // 2, planes // divn

    key = jax.random.PRNGKey(0)
    ks = jax.random.split(key, 17)

    def nrm(k, shape, scale):
        return (scale * jax.random.normal(k, shape)).astype(jnp.float32)

    params = {
        'w1': nrm(ks[0], (3, 3, inplanes, C_mid), 1.0 / np.sqrt(9 * inplanes)),
        'bn1_gamma': (1.0 + nrm(ks[1], (C_mid,), 0.1)),
        'bn1_beta': nrm(ks[2], (C_mid,), 0.1),
        'bn1_mean': nrm(ks[3], (C_mid,), 0.1),
        'bn1_var': (1.0 + 0.1 * jnp.abs(jax.random.normal(ks[4], (C_mid,)))).astype(jnp.float32),
        'w2': nrm(ks[5], (3, 3, C_mid, C_mid), 1.0 / np.sqrt(9 * C_mid)),
        'bn2_gamma': (1.0 + nrm(ks[6], (C_mid,), 0.1)),
        'bn2_beta': nrm(ks[7], (C_mid,), 0.1),
        'bn2_mean': nrm(ks[8], (C_mid,), 0.1),
        'bn2_var': (1.0 + 0.1 * jnp.abs(jax.random.normal(ks[9], (C_mid,)))).astype(jnp.float32),
        'w3': nrm(ks[10], (3, 3, C_mid, planes), 1.0 / np.sqrt(9 * C_mid)),
        'b3': nrm(ks[11], (planes,), 0.1),
        'fc1_w': nrm(ks[12], (planes, C_hid), 1.0 / np.sqrt(planes)),
        'fc1_b': nrm(ks[13], (C_hid,), 0.05),
        'fc2_w': nrm(ks[14], (C_hid, planes), 1.0 / np.sqrt(C_hid)),
        'fc2_b': nrm(ks[15], (planes,), 0.05),
    }
    x = jax.random.normal(ks[16], (N, inplanes, H, W), jnp.float32)

    # Performance default: bf16 MXU operands.
    out_bf16 = jax.block_until_ready(
        feature_block_forward(x, params, planes=planes, divn=divn))
    # Full-f32 path for a tight numerical check.
    out_f32 = jax.block_until_ready(
        feature_block_forward(x, params, planes=planes, divn=divn,
                              mxu_dtype=jnp.float32))
    ref = jax.block_until_ready(
        feature_block_reference(x, params, planes=planes, divn=divn))

    assert out_f32.shape == (N, planes, H // 2, W // 2), out_f32.shape
    assert out_bf16.shape == (N, planes, H // 2, W // 2), out_bf16.shape
    np.testing.assert_allclose(np.asarray(out_f32), np.asarray(ref),
                               rtol=2e-2, atol=2e-3)
    np.testing.assert_allclose(np.asarray(out_bf16), np.asarray(ref),
                               rtol=5e-2, atol=5e-3)
    print("KERNEL_OK")
</pallas_src>

<mosaic_0001>
module attributes {stable_mosaic.version = 11 : i64} {
  func.func @kernel(%arg0: i32, %arg1: memref<1x4x384xf32, #tpu.memory_space<vmem>>, %arg2: memref<4x36xbf16, #tpu.memory_space<vmem>>, %arg3: memref<4x1xf32, #tpu.memory_space<vmem>>, %arg4: memref<4x1xf32, #tpu.memory_space<vmem>>, %arg5: memref<4x36xbf16, #tpu.memory_space<vmem>>, %arg6: memref<4x1xf32, #tpu.memory_space<vmem>>, %arg7: memref<4x1xf32, #tpu.memory_space<vmem>>, %arg8: memref<8x36xbf16, #tpu.memory_space<vmem>>, %arg9: memref<8x1xf32, #tpu.memory_space<vmem>>, %arg10: memref<2x8xf32, #tpu.memory_space<vmem>>, %arg11: memref<2x1xf32, #tpu.memory_space<vmem>>, %arg12: memref<8x2xf32, #tpu.memory_space<vmem>>, %arg13: memref<8x1xf32, #tpu.memory_space<vmem>>, %arg14: memref<1x384xf32, #tpu.memory_space<vmem>>, %arg15: memref<1x8x384xf32, #tpu.memory_space<vmem>>) attributes {dimension_semantics = [#tpu.dimension_semantics<parallel>], iteration_bounds = array<i64: 2>, scalar_prefetch = 0 : i64, scratch_operands = 0 : i64, tpu.core_type = #tpu.core_type<tc>, window_params = [{transform_indices = @transform_0, window_bounds = array<i64: 1, 4, 384>}, {pipeline_mode = #tpu.pipeline_mode<synchronous>, transform_indices = @transform_1, window_bounds = array<i64: 4, 36>}, {pipeline_mode = #tpu.pipeline_mode<synchronous>, transform_indices = @transform_2, window_bounds = array<i64: 4, 1>}, {pipeline_mode = #tpu.pipeline_mode<synchronous>, transform_indices = @transform_3, window_bounds = array<i64: 4, 1>}, {pipeline_mode = #tpu.pipeline_mode<synchronous>, transform_indices = @transform_4, window_bounds = array<i64: 4, 36>}, {pipeline_mode = #tpu.pipeline_mode<synchronous>, transform_indices = @transform_5, window_bounds = array<i64: 4, 1>}, {pipeline_mode = #tpu.pipeline_mode<synchronous>, transform_indices = @transform_6, window_bounds = array<i64: 4, 1>}, {pipeline_mode = #tpu.pipeline_mode<synchronous>, transform_indices = @transform_7, window_bounds = array<i64: 8, 36>}, {pipeline_mode = #tpu.pipeline_mode<synchronous>, transform_indices = @transform_8, window_bounds = array<i64: 8, 1>}, {pipeline_mode = #tpu.pipeline_mode<synchronous>, transform_indices = @transform_9, window_bounds = array<i64: 2, 8>}, {pipeline_mode = #tpu.pipeline_mode<synchronous>, transform_indices = @transform_10, window_bounds = array<i64: 2, 1>}, {pipeline_mode = #tpu.pipeline_mode<synchronous>, transform_indices = @transform_11, window_bounds = array<i64: 8, 2>}, {pipeline_mode = #tpu.pipeline_mode<synchronous>, transform_indices = @transform_12, window_bounds = array<i64: 8, 1>}, {pipeline_mode = #tpu.pipeline_mode<synchronous>, transform_indices = @transform_13, window_bounds = array<i64: 1, 384>}, {transform_indices = @transform_14, window_bounds = array<i64: 1, 8, 384>}]} {
    %c0 = arith.constant 0 : index
    %c0_0 = arith.constant 0 : index
    %0 = vector.load %arg14[%c0, %c0_0] : memref<1x384xf32, #tpu.memory_space<vmem>>, vector<1x384xf32>
    %1 = vector.shape_cast %0 : vector<1x384xf32> to vector<1x384xf32>
    %2 = vector.broadcast %1 : vector<1x384xf32> to vector<4x384xf32>
    %c0_1 = arith.constant 0 : index
    %c0_2 = arith.constant 0 : index
    %c0_3 = arith.constant 0 : index
    %3 = vector.load %arg1[%c0_1, %c0_2, %c0_3] : memref<1x4x384xf32, #tpu.memory_space<vmem>>, vector<1x4x384xf32>
    %4 = vector.shape_cast %3 : vector<1x4x384xf32> to vector<4x384xf32>
    %c19_i32 = arith.constant 19 : i32
    %5 = tpu.dynamic_rotate %4 by %c19_i32 dim 1 : vector<4x384xf32>, i32 -> vector<4x384xf32>
    %c18_i32 = arith.constant 18 : i32
    %6 = tpu.dynamic_rotate %4 by %c18_i32 dim 1 : vector<4x384xf32>, i32 -> vector<4x384xf32>
    %c17_i32 = arith.constant 17 : i32
    %7 = tpu.dynamic_rotate %4 by %c17_i32 dim 1 : vector<4x384xf32>, i32 -> vector<4x384xf32>
    %c1_i32 = arith.constant 1 : i32
    %8 = tpu.dynamic_rotate %4 by %c1_i32 dim 1 : vector<4x384xf32>, i32 -> vector<4x384xf32>
    %c383_i32 = arith.constant 383 : i32
    %9 = tpu.dynamic_rotate %4 by %c383_i32 dim 1 : vector<4x384xf32>, i32 -> vector<4x384xf32>
    %c367_i32 = arith.constant 367 : i32
    %10 = tpu.dynamic_rotate %4 by %c367_i32 dim 1 : vector<4x384xf32>, i32 -> vector<4x384xf32>
    %c366_i32 = arith.constant 366 : i32
    %11 = tpu.dynamic_rotate %4 by %c366_i32 dim 1 : vector<4x384xf32>, i32 -> vector<4x384xf32>
    %c365_i32 = arith.constant 365 : i32
    %12 = tpu.dynamic_rotate %4 by %c365_i32 dim 1 : vector<4x384xf32>, i32 -> vector<4x384xf32>
    %13 = tpu.concatenate %5, %6, %7, %8, %4, %9, %10, %11, %12 in 0 : vector<4x384xf32>, vector<4x384xf32>, vector<4x384xf32>, vector<4x384xf32>, vector<4x384xf32>, vector<4x384xf32>, vector<4x384xf32>, vector<4x384xf32>, vector<4x384xf32> -> vector<36x384xf32>
    %c0_4 = arith.constant 0 : index
    %c0_5 = arith.constant 0 : index
    %14 = vector.load %arg2[%c0_4, %c0_5] : memref<4x36xbf16, #tpu.memory_space<vmem>>, vector<4x36xbf16>
    %15 = arith.truncf %13 : vector<36x384xf32> to vector<36x384xbf16>
    %cst = arith.constant dense<0.000000e+00> : vector<4x384xf32>
    %16 = tpu.matmul %14, %15, %cst {dimension_numbers = #tpu.dot_dimension_numbers<[1], [0], [0], [1], [0, 0, 1, 1], [], []>} : vector<4x36xbf16>, vector<36x384xbf16>, vector<4x384xf32> -> vector<4x384xf32>
    %cst_6 = arith.constant 0.000000e+00 : f32
    %17 = vector.broadcast %cst_6 : f32 to vector<4x384xf32>
    %18 = arith.maximumf %16, %17 : vector<4x384xf32>
    %c0_7 = arith.constant 0 : index
    %c0_8 = arith.constant 0 : index
    %19 = vector.load %arg3[%c0_7, %c0_8] : memref<4x1xf32, #tpu.memory_space<vmem>>, vector<4x1xf32>
    %20 = vector.broadcast %19 : vector<4x1xf32> to vector<4x384xf32>
    %21 = arith.mulf %18, %20 : vector<4x384xf32>
    %c0_9 = arith.constant 0 : index
    %c0_10 = arith.constant 0 : index
    %22 = vector.load %arg4[%c0_9, %c0_10] : memref<4x1xf32, #tpu.memory_space<vmem>>, vector<4x1xf32>
    %23 = vector.broadcast %22 : vector<4x1xf32> to vector<4x384xf32>
    %24 = arith.addf %21, %23 : vector<4x384xf32>
    %25 = arith.mulf %24, %2 : vector<4x384xf32>
    %c19_i32_11 = arith.constant 19 : i32
    %26 = tpu.dynamic_rotate %25 by %c19_i32_11 dim 1 : vector<4x384xf32>, i32 -> vector<4x384xf32>
    %c18_i32_12 = arith.constant 18 : i32
    %27 = tpu.dynamic_rotate %25 by %c18_i32_12 dim 1 : vector<4x384xf32>, i32 -> vector<4x384xf32>
    %c17_i32_13 = arith.constant 17 : i32
    %28 = tpu.dynamic_rotate %25 by %c17_i32_13 dim 1 : vector<4x384xf32>, i32 -> vector<4x384xf32>
    %c1_i32_14 = arith.constant 1 : i32
    %29 = tpu.dynamic_rotate %25 by %c1_i32_14 dim 1 : vector<4x384xf32>, i32 -> vector<4x384xf32>
    %c383_i32_15 = arith.constant 383 : i32
    %30 = tpu.dynamic_rotate %25 by %c383_i32_15 dim 1 : vector<4x384xf32>, i32 -> vector<4x384xf32>
    %c367_i32_16 = arith.constant 367 : i32
    %31 = tpu.dynamic_rotate %25 by %c367_i32_16 dim 1 : vector<4x384xf32>, i32 -> vector<4x384xf32>
    %c366_i32_17 = arith.constant 366 : i32
    %32 = tpu.dynamic_rotate %25 by %c366_i32_17 dim 1 : vector<4x384xf32>, i32 -> vector<4x384xf32>
    %c365_i32_18 = arith.constant 365 : i32
    %33 = tpu.dynamic_rotate %25 by %c365_i32_18 dim 1 : vector<4x384xf32>, i32 -> vector<4x384xf32>
    %34 = tpu.concatenate %26, %27, %28, %29, %25, %30, %31, %32, %33 in 0 : vector<4x384xf32>, vector<4x384xf32>, vector<4x384xf32>, vector<4x384xf32>, vector<4x384xf32>, vector<4x384xf32>, vector<4x384xf32>, vector<4x384xf32>, vector<4x384xf32> -> vector<36x384xf32>
    %c0_19 = arith.constant 0 : index
    %c0_20 = arith.constant 0 : index
    %35 = vector.load %arg5[%c0_19, %c0_20] : memref<4x36xbf16, #tpu.memory_space<vmem>>, vector<4x36xbf16>
    %36 = arith.truncf %34 : vector<36x384xf32> to vector<36x384xbf16>
    %cst_21 = arith.constant dense<0.000000e+00> : vector<4x384xf32>
    %37 = tpu.matmul %35, %36, %cst_21 {dimension_numbers = #tpu.dot_dimension_numbers<[1], [0], [0], [1], [0, 0, 1, 1], [], []>} : vector<4x36xbf16>, vector<36x384xbf16>, vector<4x384xf32> -> vector<4x384xf32>
    %cst_22 = arith.constant 0.000000e+00 : f32
    %38 = vector.broadcast %cst_22 : f32 to vector<4x384xf32>
    %39 = arith.maximumf %37, %38 : vector<4x384xf32>
    %c0_23 = arith.constant 0 : index
    %c0_24 = arith.constant 0 : index
    %40 = vector.load %arg6[%c0_23, %c0_24] : memref<4x1xf32, #tpu.memory_space<vmem>>, vector<4x1xf32>
    %41 = vector.broadcast %40 : vector<4x1xf32> to vector<4x384xf32>
    %42 = arith.mulf %39, %41 : vector<4x384xf32>
    %c0_25 = arith.constant 0 : index
    %c0_26 = arith.constant 0 : index
    %43 = vector.load %arg7[%c0_25, %c0_26] : memref<4x1xf32, #tpu.memory_space<vmem>>, vector<4x1xf32>
    %44 = vector.broadcast %43 : vector<4x1xf32> to vector<4x384xf32>
    %45 = arith.addf %42, %44 : vector<4x384xf32>
    %46 = arith.mulf %45, %2 : vector<4x384xf32>
    %c19_i32_27 = arith.constant 19 : i32
    %47 = tpu.dynamic_rotate %46 by %c19_i32_27 dim 1 : vector<4x384xf32>, i32 -> vector<4x384xf32>
    %c18_i32_28 = arith.constant 18 : i32
    %48 = tpu.dynamic_rotate %46 by %c18_i32_28 dim 1 : vector<4x384xf32>, i32 -> vector<4x384xf32>
    %c17_i32_29 = arith.constant 17 : i32
    %49 = tpu.dynamic_rotate %46 by %c17_i32_29 dim 1 : vector<4x384xf32>, i32 -> vector<4x384xf32>
    %c1_i32_30 = arith.constant 1 : i32
    %50 = tpu.dynamic_rotate %46 by %c1_i32_30 dim 1 : vector<4x384xf32>, i32 -> vector<4x384xf32>
    %c383_i32_31 = arith.constant 383 : i32
    %51 = tpu.dynamic_rotate %46 by %c383_i32_31 dim 1 : vector<4x384xf32>, i32 -> vector<4x384xf32>
    %c367_i32_32 = arith.constant 367 : i32
    %52 = tpu.dynamic_rotate %46 by %c367_i32_32 dim 1 : vector<4x384xf32>, i32 -> vector<4x384xf32>
    %c366_i32_33 = arith.constant 366 : i32
    %53 = tpu.dynamic_rotate %46 by %c366_i32_33 dim 1 : vector<4x384xf32>, i32 -> vector<4x384xf32>
    %c365_i32_34 = arith.constant 365 : i32
    %54 = tpu.dynamic_rotate %46 by %c365_i32_34 dim 1 : vector<4x384xf32>, i32 -> vector<4x384xf32>
    %55 = tpu.concatenate %47, %48, %49, %50, %46, %51, %52, %53, %54 in 0 : vector<4x384xf32>, vector<4x384xf32>, vector<4x384xf32>, vector<4x384xf32>, vector<4x384xf32>, vector<4x384xf32>, vector<4x384xf32>, vector<4x384xf32>, vector<4x384xf32> -> vector<36x384xf32>
    %c0_35 = arith.constant 0 : index
    %c0_36 = arith.constant 0 : index
    %56 = vector.load %arg8[%c0_35, %c0_36] : memref<8x36xbf16, #tpu.memory_space<vmem>>, vector<8x36xbf16>
    %57 = arith.truncf %55 : vector<36x384xf32> to vector<36x384xbf16>
    %cst_37 = arith.constant dense<0.000000e+00> : vector<8x384xf32>
    %58 = tpu.matmul %56, %57, %cst_37 {dimension_numbers = #tpu.dot_dimension_numbers<[1], [0], [0], [1], [0, 0, 1, 1], [], []>} : vector<8x36xbf16>, vector<36x384xbf16>, vector<8x384xf32> -> vector<8x384xf32>
    %c0_38 = arith.constant 0 : index
    %c0_39 = arith.constant 0 : index
    %59 = vector.load %arg9[%c0_38, %c0_39] : memref<8x1xf32, #tpu.memory_space<vmem>>, vector<8x1xf32>
    %60 = vector.broadcast %59 : vector<8x1xf32> to vector<8x384xf32>
    %61 = arith.addf %58, %60 : vector<8x384xf32>
    %cst_40 = arith.constant 0.000000e+00 : f32
    %62 = vector.broadcast %cst_40 : f32 to vector<8x384xf32>
    %63 = arith.maximumf %61, %62 : vector<8x384xf32>
    %c0_41 = arith.constant 0 : index
    %c0_42 = arith.constant 0 : index
    %64 = vector.load %arg9[%c0_41, %c0_42] : memref<8x1xf32, #tpu.memory_space<vmem>>, vector<8x1xf32>
    %65 = vector.broadcast %64 : vector<8x1xf32> to vector<8x384xf32>
    %66 = arith.subf %63, %65 : vector<8x384xf32>
    %cst_43 = arith.constant 0.000000e+00 : f32
    %67 = vector.broadcast %cst_43 : f32 to vector<8x384xf32>
    %68 = arith.cmpf ogt, %66, %67 : vector<8x384xf32>
    %cst_44 = arith.constant 1.000000e+00 : f32
    %cst_45 = arith.constant 0.000000e+00 : f32
    %69 = vector.broadcast %cst_44 : f32 to vector<8x384xf32>
    %70 = vector.broadcast %cst_45 : f32 to vector<8x384xf32>
    %71 = arith.select %68, %69, %70 : vector<8x384xi1>, vector<8x384xf32>
    %72 = vector.broadcast %0 : vector<1x384xf32> to vector<8x384xf32>
    %73 = arith.mulf %71, %72 : vector<8x384xf32>
    %74 = vector.shape_cast %73 : vector<8x384xf32> to vector<8x1x384xf32>
    %cst_46 = arith.constant dense<0.000000e+00> : vector<8x1xf32>
    %75 = vector.multi_reduction <add>, %74, %cst_46 [2] : vector<8x1x384xf32> to vector<8x1xf32>
    %cst_47 = arith.constant 3.906250e-03 : f32
    %76 = vector.broadcast %cst_47 : f32 to vector<8x1xf32>
    %77 = arith.mulf %75, %76 : vector<8x1xf32>
    %c0_48 = arith.constant 0 : index
    %c0_49 = arith.constant 0 : index
    %78 = vector.load %arg10[%c0_48, %c0_49] : memref<2x8xf32, #tpu.memory_space<vmem>>, vector<2x8xf32>
    %cst_50 = arith.constant dense<0.000000e+00> : vector<2x1xf32>
    %79 = tpu.matmul %78, %77, %cst_50 {dimension_numbers = #tpu.dot_dimension_numbers<[1], [0], [0], [1], [0, 0, 1, 1], [], []>} : vector<2x8xf32>, vector<8x1xf32>, vector<2x1xf32> -> vector<2x1xf32>
    %c0_51 = arith.constant 0 : index
    %c0_52 = arith.constant 0 : index
    %80 = vector.load %arg11[%c0_51, %c0_52] : memref<2x1xf32, #tpu.memory_space<vmem>>, vector<2x1xf32>
    %81 = arith.addf %79, %80 : vector<2x1xf32>
    %c0_53 = arith.constant 0 : index
    %c0_54 = arith.constant 0 : index
    %82 = vector.load %arg12[%c0_53, %c0_54] : memref<8x2xf32, #tpu.memory_space<vmem>>, vector<8x2xf32>
    %cst_55 = arith.constant dense<0.000000e+00> : vector<8x1xf32>
    %83 = tpu.matmul %82, %81, %cst_55 {dimension_numbers = #tpu.dot_dimension_numbers<[1], [0], [0], [1], [0, 0, 1, 1], [], []>} : vector<8x2xf32>, vector<2x1xf32>, vector<8x1xf32> -> vector<8x1xf32>
    %c0_56 = arith.constant 0 : index
    %c0_57 = arith.constant 0 : index
    %84 = vector.load %arg13[%c0_56, %c0_57] : memref<8x1xf32, #tpu.memory_space<vmem>>, vector<8x1xf32>
    %85 = arith.addf %83, %84 : vector<8x1xf32>
    %86 = vector.shape_cast %85 : vector<8x1xf32> to vector<8x1x1xf32>
    %87 = vector.shape_cast %86 : vector<8x1x1xf32> to vector<8x1x1xf32>
    %88 = vector.broadcast %87 : vector<8x1x1xf32> to vector<8x1x384xf32>
    %89 = vector.shape_cast %88 : vector<8x1x384xf32> to vector<8x384xf32>
    %90 = arith.mulf %63, %89 : vector<8x384xf32>
    %c383_i32_58 = arith.constant 383 : i32
    %91 = tpu.dynamic_rotate %90 by %c383_i32_58 dim 1 : vector<8x384xf32>, i32 -> vector<8x384xf32>
    %92 = arith.addf %90, %91 : vector<8x384xf32>
    %c366_i32_59 = arith.constant 366 : i32
    %93 = tpu.dynamic_rotate %90 by %c366_i32_59 dim 1 : vector<8x384xf32>, i32 -> vector<8x384xf32>
    %94 = arith.addf %92, %93 : vector<8x384xf32>
    %c365_i32_60 = arith.constant 365 : i32
    %95 = tpu.dynamic_rotate %90 by %c365_i32_60 dim 1 : vector<8x384xf32>, i32 -> vector<8x384xf32>
    %96 = arith.addf %94, %95 : vector<8x384xf32>
    %cst_61 = arith.constant 2.500000e-01 : f32
    %97 = vector.broadcast %cst_61 : f32 to vector<8x384xf32>
    %98 = arith.mulf %97, %96 : vector<8x384xf32>
    %c0_62 = arith.constant 0 : index
    %c0_63 = arith.constant 0 : index
    %c0_64 = arith.constant 0 : index
    %99 = vector.load %arg15[%c0_62, %c0_63, %c0_64] : memref<1x8x384xf32, #tpu.memory_space<vmem>>, vector<1x8x384xf32>
    %100 = vector.shape_cast %99 : vector<1x8x384xf32> to vector<8x384xf32>
    %101 = vector.shape_cast %98 : vector<8x384xf32> to vector<1x8x384xf32>
    tpu.vector_store %arg15[%c0_62, %c0_63, %c0_64], %101 {strides = array<i32>} : memref<1x8x384xf32, #tpu.memory_space<vmem>>, vector<1x8x384xf32>,
    return
  }
  func.func @transform_0(%arg0: i32) -> (i32, i32, i32) {
    %c0_i32 = arith.constant 0 : i32
    %c0_i32_0 = arith.constant 0 : i32
    %c0_i32_1 = arith.constant 0 : i32
    return %arg0, %c0_i32, %c0_i32_0 : i32, i32, i32
  }
  func.func @transform_1(%arg0: i32) -> (i32, i32) {
    %c0_i32 = arith.constant 0 : i32
    %c0_i32_0 = arith.constant 0 : i32
    %c0_i32_1 = arith.constant 0 : i32
    return %c0_i32, %c0_i32_0 : i32, i32
  }
  func.func @transform_2(%arg0: i32) -> (i32, i32) {
    %c0_i32 = arith.constant 0 : i32
    %c0_i32_0 = arith.constant 0 : i32
    %c0_i32_1 = arith.constant 0 : i32
    return %c0_i32, %c0_i32_0 : i32, i32
  }
  func.func @transform_3(%arg0: i32) -> (i32, i32) {
    %c0_i32 = arith.constant 0 : i32
    %c0_i32_0 = arith.constant 0 : i32
    %c0_i32_1 = arith.constant 0 : i32
    return %c0_i32, %c0_i32_0 : i32, i32
  }
  func.func @transform_4(%arg0: i32) -> (i32, i32) {
    %c0_i32 = arith.constant 0 : i32
    %c0_i32_0 = arith.constant 0 : i32
    %c0_i32_1 = arith.constant 0 : i32
    return %c0_i32, %c0_i32_0 : i32, i32
  }
  func.func @transform_5(%arg0: i32) -> (i32, i32) {
    %c0_i32 = arith.constant 0 : i32
    %c0_i32_0 = arith.constant 0 : i32
    %c0_i32_1 = arith.constant 0 : i32
    return %c0_i32, %c0_i32_0 : i32, i32
  }
  func.func @transform_6(%arg0: i32) -> (i32, i32) {
    %c0_i32 = arith.constant 0 : i32
    %c0_i32_0 = arith.constant 0 : i32
    %c0_i32_1 = arith.constant 0 : i32
    return %c0_i32, %c0_i32_0 : i32, i32
  }
  func.func @transform_7(%arg0: i32) -> (i32, i32) {
    %c0_i32 = arith.constant 0 : i32
    %c0_i32_0 = arith.constant 0 : i32
    %c0_i32_1 = arith.constant 0 : i32
    return %c0_i32, %c0_i32_0 : i32, i32
  }
  func.func @transform_8(%arg0: i32) -> (i32, i32) {
    %c0_i32 = arith.constant 0 : i32
    %c0_i32_0 = arith.constant 0 : i32
    %c0_i32_1 = arith.constant 0 : i32
    return %c0_i32, %c0_i32_0 : i32, i32
  }
  func.func @transform_9(%arg0: i32) -> (i32, i32) {
    %c0_i32 = arith.constant 0 : i32
    %c0_i32_0 = arith.constant 0 : i32
    %c0_i32_1 = arith.constant 0 : i32
    return %c0_i32, %c0_i32_0 : i32, i32
  }
  func.func @transform_10(%arg0: i32) -> (i32, i32) {
    %c0_i32 = arith.constant 0 : i32
    %c0_i32_0 = arith.constant 0 : i32
    %c0_i32_1 = arith.constant 0 : i32
    return %c0_i32, %c0_i32_0 : i32, i32
  }
  func.func @transform_11(%arg0: i32) -> (i32, i32) {
    %c0_i32 = arith.constant 0 : i32
    %c0_i32_0 = arith.constant 0 : i32
    %c0_i32_1 = arith.constant 0 : i32
    return %c0_i32, %c0_i32_0 : i32, i32
  }
  func.func @transform_12(%arg0: i32) -> (i32, i32) {
    %c0_i32 = arith.constant 0 : i32
    %c0_i32_0 = arith.constant 0 : i32
    %c0_i32_1 = arith.constant 0 : i32
    return %c0_i32, %c0_i32_0 : i32, i32
  }
  func.func @transform_13(%arg0: i32) -> (i32, i32) {
    %c0_i32 = arith.constant 0 : i32
    %c0_i32_0 = arith.constant 0 : i32
    %c0_i32_1 = arith.constant 0 : i32
    return %c0_i32, %c0_i32_0 : i32, i32
  }
  func.func @transform_14(%arg0: i32) -> (i32, i32, i32) {
    %c0_i32 = arith.constant 0 : i32
    %c0_i32_0 = arith.constant 0 : i32
    %c0_i32_1 = arith.constant 0 : i32
    return %arg0, %c0_i32, %c0_i32_0 : i32, i32, i32
  }
}

</mosaic_0001>

<bundles_post_ra>
// kernel: tpu_custom_call.1
= control target key start
LH: loop header
LB: loop body
LE: loop exit
PB: predicated region body
PF: predicated region fallthrough
CT: control target
= control target key end

     0   :  { %s3047_s0 = inlined_call_operand.vmem [shape: f32[2,4,384], index: 0, kind: input, shape index: {}]   ;;  %s3048_s1 = inlined_call_operand.vmem [shape: bf16[4,36], index: 1, kind: input, shape index: {}]   ;;  %s3049_s2 = inlined_call_operand.vmem [shape: f32[4,1], index: 2, kind: input, shape index: {}]   ;;  %s3050_s3 = inlined_call_operand.vmem [shape: f32[4,1], index: 3, kind: input, shape index: {}]   ;;  %s3051_s4 = inlined_call_operand.vmem [shape: bf16[4,36], index: 4, kind: input, shape index: {}]   ;;  %s3052_s5 = inlined_call_operand.vmem [shape: f32[4,1], index: 5, kind: input, shape index: {}]   ;;  %s3053_s6 = inlined_call_operand.vmem [shape: f32[4,1], index: 6, kind: input, shape index: {}]   ;;  %s3054_s7 = inlined_call_operand.vmem [shape: bf16[8,36], index: 7, kind: input, shape index: {}]   ;;  %s3055_s8 = inlined_call_operand.vmem [shape: f32[8,1], index: 8, kind: input, shape index: {}]   ;;  %s3056_s9 = inlined_call_operand.vmem [shape: f32[2,8], index: 9, kind: input, shape index: {}]   ;;  %s3057_s10 = inlined_call_operand.vmem [shape: f32[2,1], index: 10, kind: input, shape index: {}]   ;;  %s3058_s11 = inlined_call_operand.vmem [shape: f32[8,2], index: 11, kind: input, shape index: {}]   ;;  %s3059_s12 = inlined_call_operand.vmem [shape: f32[8,1], index: 12, kind: input, shape index: {}]   ;;  %s3060_s13 = inlined_call_operand.vmem [shape: f32[1,384], index: 13, kind: input, shape index: {}]   ;;  %s3061_s14 = inlined_call_operand.hbm [shape: f32[2,8,384], index: 14, kind: output, shape index: {}]  }
   0x1   :  { %3076 = sst [smem:[#allocation5_spill]] %s3047_s0 }
   0x2   :  { %3077 = sst [smem:[#allocation6_spill]] %s3048_s1 }
   0x3   :  { %3078 = sst [smem:[#allocation7_spill]] %s3049_s2 }
   0x4   :  { %3079 = sst [smem:[#allocation8_spill]] %s3050_s3 }
   0x5   :  { %19 = vsyncpa [#allocation3], 0 }
   0x6   :  { %21 = vsyncpa [#allocation3 + $0x1], 0  ;;  %s2396_s29 = smov 0   ;;  %s2398_s30 = smov 0  }
   0x7   :  { %s2400_s15 = smov 0   ;;  %s2402_s16 = smov 0  }
   0x8 LB: > { %s2417_s17 = sadd.s32 4294967295, %s2306_s16   ;;  %s1991_s18 = sadd.s32 4294967294, %s2306_s16   ;;  %s2306_s16 = sphi %s2402_s16, %s3096_s16   ;;  %s2302_s15 = sphi %s2400_s15, %s3095_s15   ;;  %s2298_s30 = sphi %s2398_s30, %s3094_s30   ;;  %s2294_s29 = sphi %s2396_s29, %s3093_s29  }
   0x9   : > { %s2421_s19 = sadd.s32 1, %s2306_s16   ;;  %s333_s20 = sadd.s32 1, %s2302_s15 }
   0xa   : > { %s330_s21 = ssub.s32 %s2306_s16, %s2421_s19  ;;  %p343_p0 = scmp.ne.s32.totalorder %s2302_s15, %s2298_s30 }
   0xb   : > { %p331_p1 = scmp.eq.s32.totalorder %s330_s21, 0  ;;  %p344_p2 = scmp.eq.s32.totalorder %s2417_s17, 1 }
   0xc   : > { %p349_p3 = scmp.ne.s32.totalorder %s2298_s30, %s2294_s29  ;;  %p350_p4 = scmp.eq.s32.totalorder %s1991_s18, 1 }
   0xd   : > { %s2432_s22 = scalar_select %p331_p1, %s2302_s15, %s333_s20  }
   0xe   : > { %p2434_p5 = por %p344_p2, %p343_p0  ;;  %p2438_p6 = por %p350_p4, %p349_p3 }
   0xf   : > { %p1994_p7 = scmp.ge.s32.totalorder %s2306_s16, 1  ;;  %p415_p8 = scmp.lt.s32.totalorder %s2306_s16, 3 }
  0x11   : > { %p416_p9 = pnand %p1994_p7, %p415_p8 }
  0x12   : > { %p461_p10 = scmp.lt.s32.totalorder (!%p416_p9), %s2417_s17, 1  ;;  %s3082_s0 = sld [smem:[#allocation5_spill]] (!%p416_p9)  ;;  %v2310_v4 = vmov (!%p416_p9), 0.0   ;;  %vm2316_vm0 = vmmov (!%p416_p9), 0   ;;  %v2317_v6 = vmov (!%p416_p9), 0   ;;  %v469_v10 = vlaneseq (!%p416_p9) }
  0x13   : > { %419 = sbr.rel (%p416_p9) target bundleno = 2080 (0x820), region = 76  ;;  %s3070_s20 = smov (!%p416_p9), 18   ;;  %2027 = vmatprep.subr.bf16.mxu1 (!%p416_p9), %v2310_v4  ;;  %2033 = vmatprep.mubr.msk.bf16.mxu1 (!%p416_p9), %vm2316_vm0, %v2310_v4  ;;  %vm607_vm5 = vcmask (!%p416_p9), 1043456   ;;  %vm634_vm10 = vcmask (!%p416_p9), 1041408   ;;  %vm630_vm11 = vcmask (!%p416_p9), 293888   ;;  %vm1430_vm15 = vcmask (!%p416_p9), 1040384  }
  0x14   : > { %s3074_s21 = smov (!%p416_p9), 1   ;;  %s3066_s27 = smov (!%p416_p9), 110   ;;  %676 = vmatprep.mubr.bf16.mxu0 (!%p416_p9), %v2317_v6  ;;  %2161 = vset.pattern.permute.xlu0 (!%p416_p9), %v2317_v6  ;;  %v2498_v12 = vand.u32 (!%p416_p9), 127, %v469_v10 }
  0x15   : > { %s3064_s28 = smov (!%p416_p9), 127   ;;  %2162 = vset.pattern.permute.xlu1 (!%p416_p9), %v2317_v6  ;;  %s3083_s3 = sld [smem:[#allocation8_spill]] (!%p416_p9) }
  0x16   : > { %s3084_s2 = sld [smem:[#allocation7_spill]] (!%p416_p9)  ;;  %vm507_vm1 = vcmp.lt.s32.totalorder (!%p416_p9), %v2498_v12, 18  ;;  %vm527_vm2 = vcmp.lt.s32.totalorder (!%p416_p9), %v2498_v12, 1  ;;  %vm517_vm3 = vcmp.lt.s32.totalorder (!%p416_p9), %v2498_v12, 17  ;;  %vm497_vm4 = vcmp.lt.s32.totalorder (!%p416_p9), %v2498_v12, 19  ;;  %s3085_s1 = sld [smem:[#allocation6_spill]] (!%p416_p9) }
  0x17   : > { %vm537_vm6 = vcmp.lt.s32.totalorder (!%p416_p9), %v2498_v12, 127  ;;  %vm557_vm7 = vcmp.lt.s32.totalorder (!%p416_p9), %v2498_v12, 110  ;;  %vm547_vm8 = vcmp.lt.s32.totalorder (!%p416_p9), %v2498_v12, 111  ;;  %vm567_vm9 = vcmp.lt.s32.totalorder (!%p416_p9), %v2498_v12, 109 }
  0x1a   : > { %s462_s25 = scalar_select %p461_p10, %s2417_s17, 1 }
  0x1b   : > { %v737_v7 = vld [vmem:[%s3083_s3] sm:$0xf]  ;;  %s3092_s3 = smov 1  }
  0x1c   : > { %s2068_s26 = smul.u32 12, %s462_s25  ;;  %s3068_s25 = smov 17   ;;  %v728_v8 = vld [vmem:[%s3084_s2] sm:$0xf] }
  0x1e   : > { %s465_s18 = scalar_lea.vmem %s3082_s0, %s2068_s26  ;;  %s3062_s26 = smov 19  }
  0x1f   : > { %v2449_v0 = vld [vmem:[%s465_s18 + $0x8] sm:$0xf]  ;;  %v2451_v1 = vld [vmem:[%s465_s18] sm:$0xff]  ;;  %s2315_s18 = smov 111   ;;  %s3091_s0 = smov 109  }
  0x20   : > { %505 = vrot.lane.b32.xlu1 %v2449_v0, %s3070_s20  ;;  %v2457_v2 = vcombine.high %v2451_v1, %v2451_v1 }
  0x22   : > { %v2121_v3 = vpack.i.bf16 %v2457_v2, %v2451_v1  ;;  %v2146_v5 = vpack.i.bf16 %v2449_v0, %v2457_v2 }
  0x24   : > { %525 = vrot.lane.b32.xlu1 %v2449_v0, %s3074_s21  ;;  %2122 = vrot.lane.b32.xlu0 %v2121_v3, %s3070_s20  ;;  %s3086_s20 = smov 18  }
  0x28   : > { %2137 = vrot.lane.b32.xlu1 %v2121_v3, %s3068_s25  ;;  %2127 = vrot.lane.b32.xlu0 %v2121_v3, %s3074_s21 }
  0x2c   : > { %515 = vrot.lane.b32.xlu1 %v2449_v0, %s3068_s25  ;;  %2132 = vrot.lane.b32.xlu0 %v2121_v3, %s3062_s26  ;;  %s3087_s25 = smov 17  }
  0x30   : > { %493 = vrot.lane.b32.xlu0 %v2449_v0, %s3062_s26  ;;  %2147 = vrot.lane.b32.xlu1 %v2146_v5, %s3066_s27  ;;  %s3072_s26 = smov 109  }
  0x34   : > { %2142 = vrot.lane.b32.xlu0 %v2146_v5, %s3064_s28  ;;  %551 = vrot.lane.b32.xlu1 %v2451_v1, %s3066_s27  ;;  %s3088_s27 = smov 19  }
  0x38   : > { %531 = vrot.lane.b32.xlu0 %v2451_v1, %s3064_s28  ;;  %541 = vrot.lane.b32.xlu1 %v2451_v1, %s2315_s18  ;;  %s3089_s28 = smov 110  }
  0x3c   : > { %2152 = vrot.lane.b32.xlu0 %v2146_v5, %s2315_s18  ;;  %565 = vrot.lane.b32.xlu1 %v2449_v0, %s3072_s26 }
  0x40   : > { %2157 = vrot.lane.b32.xlu0 %v2121_v3, %s3072_s26  ;;  %740 = vperm.xlu1 %2162, %v737_v7   ;;  %s3090_s26 = smov 127  }
  0x44   : > { %731 = vperm.xlu0 %2161, %v728_v8  }
  0x92   : > { %v506_v9 = vpop.permute.xlu1 %505 }
  0x96   : > { %v526_v11 = vpop.permute.xlu1 %525  ;;  %v2123_v13 = vpop.permute.xlu0 %2122 }
  0x97   : > { %v2125_v14 = vunpack.i.h.bf16 %v2123_v13  ;;  %v2124_v15 = vunpack.i.l.bf16 %v2123_v13 }
  0x99   : > { %v509_v24 = vsel %vm507_vm1, %v2124_v15, %v2125_v14  ;;  %v508_v26 = vsel %vm507_vm1, %v2125_v14, %v506_v9  ;;  %v510_v30 = vsel %vm507_vm1, %v506_v9, %v2124_v15 }
  0x9a   : > { %v2138_v16 = vpop.permute.xlu1 %2137  ;;  %v2128_v17 = vpop.permute.xlu0 %2127  ;;  %v575_v36 = vrot.slane %v509_v24, 4  ;;  %v576_v40 = vrot.slane %v508_v26, 4  ;;  %v574_v41 = vrot.slane %v510_v30, 4 }
  0x9b   : > { %v2140_v18 = vunpack.i.h.bf16 %v2138_v16  ;;  %v2139_v19 = vunpack.i.l.bf16 %v2138_v16  ;;  %v2130_v20 = vunpack.i.h.bf16 %v2128_v17  ;;  %v2129_v21 = vunpack.i.l.bf16 %v2128_v17 }
  0x9d   : > { %v528_v22 = vsel %vm527_vm2, %v2130_v20, %v526_v11  ;;  %v530_v23 = vsel %vm527_vm2, %v526_v11, %v2129_v21  ;;  %v529_v25 = vsel %vm527_vm2, %v2129_v21, %v2130_v20  ;;  %v519_v33 = vsel %vm517_vm3, %v2139_v19, %v2140_v18 }
  0x9e   : > { %v516_v27 = vpop.permute.xlu1 %515  ;;  %v2133_v28 = vpop.permute.xlu0 %2132  ;;  %v584_v29 = vrot.slane %v529_v25, 4  ;;  %v585_v34 = vrot.slane %v528_v22, 4  ;;  %v583_v35 = vrot.slane %v530_v23, 4 }
  0x9f   : > { %v2135_v31 = vunpack.i.h.bf16 %v2133_v28  ;;  %v2134_v32 = vunpack.i.l.bf16 %v2133_v28  ;;  %v518_v37 = vsel %vm517_vm3, %v2140_v18, %v516_v27  ;;  %v520_v38 = vsel %vm517_vm3, %v516_v27, %v2139_v19 }
  0xa0   : > { %v612_v44 = vsel %vm607_vm5, %v519_v33, %v584_v29  ;;  %v611_v50 = vsel %vm607_vm5, %v520_v38, %v583_v35  ;;  %v613_v52 = vsel %vm607_vm5, %v518_v37, %v585_v34 }
  0xa1   : > { %v499_v39 = vsel %vm497_vm4, %v2134_v32, %v2135_v31 }
  0xa2   : > { %v494_v42 = vpop.permute.xlu0 %493  ;;  %v609_v43 = vsel %vm607_vm5, %v499_v39, %v575_v36  ;;  %v2148_v45 = vpop.permute.xlu1 %2147 }
  0xa3   : > { %v498_v46 = vsel %vm497_vm4, %v2135_v31, %v494_v42  ;;  %v500_v47 = vsel %vm497_vm4, %v494_v42, %v2134_v32  ;;  %v622_v48 = vpack.c.bf16 %v612_v44, %v609_v43  ;;  %v2150_v59 = vunpack.i.h.bf16 %v2148_v45  ;;  %v620_v42 = vld [vmem:[%s3085_s1] sm:$0x3] }
  0xa4   : > { %v608_v49 = vsel %vm607_vm5, %v500_v47, %v574_v41  ;;  %v610_v51 = vsel %vm607_vm5, %v498_v46, %v576_v40  ;;  %v2149_v60 = vunpack.i.l.bf16 %v2148_v45  ;;  %v2586_v43 = vshrl.u32 %v469_v10, 7  ;;  %v467_v47 = vld [vmem:[%s3060_s13] sm:$0x7] }
  0xa5   : > { %644 = vmatprep.subr.bf16.mxu0 %v622_v48  ;;  %v621_v53 = vpack.c.bf16 %v611_v50, %v608_v49  ;;  %v623_v54 = vpack.c.bf16 %v613_v52, %v610_v51 }
  0xa6   : > { %v2143_v55 = vpop.permute.xlu0 %2142  ;;  %v552_v58 = vpop.permute.xlu1 %551  ;;  %v558_v8 = vsel %vm557_vm7, %v2149_v60, %v2150_v59  ;;  %v2589_v45 = vsub.s32 2, %v2586_v43 }
  0xa7   : > { %v2145_v56 = vunpack.i.h.bf16 %v2143_v55  ;;  %v2144_v57 = vunpack.i.l.bf16 %v2143_v55  ;;  %645 = vmatpush1.bf16.msra.mxu0 %v621_v53  ;;  %2028 = vmatpush3.bf16.msra.mxu1 %v623_v54  ;;  %v559_v9 = vsel %vm557_vm7, %v552_v58, %v2149_v60  ;;  %v560_v11 = vsel %vm557_vm7, %v2150_v59, %v552_v58 }
  0xa8   : > { %2029 = vmatprep.subr.bf16.mxu1 %v2310_v4  ;;  %v602_v18 = vrot.slane %v558_v8, 4  ;;  %v601_v19 = vrot.slane %v559_v9, 4  ;;  %v603_v20 = vrot.slane %v560_v11, 4 }
  0xa9   : > { %v538_v61 = vsel %vm537_vm6, %v2144_v57, %v2145_v56 }
  0xaa   : > { %v532_v62 = vpop.permute.xlu0 %531  ;;  %v593_v5 = vrot.slane %v538_v61, 4  ;;  %v542_v7 = vpop.permute.xlu1 %541  ;;  %v2598_v61 = vsub.s32 0, %v2586_v43 }
  0xab   : > { %v539_v63 = vsel %vm537_vm6, %v532_v62, %v2144_v57  ;;  %v540_v3 = vsel %vm537_vm6, %v2145_v56, %v532_v62  ;;  %v2595_v57 = vrot.slane %v467_v47, %v2589_v45 }
  0xac   : > { %v594_v13 = vrot.slane %v540_v3, 4  ;;  %v592_v14 = vrot.slane %v539_v63, 4  ;;  %v615_v21 = vsel %vm607_vm5, %v2457_v2, %v593_v5  ;;  %v2601_v3 = vsub.s32 1, %v2586_v43 }
  0xae   : > { %v2153_v15 = vpop.permute.xlu0 %2152  ;;  %v616_v25 = vsel %vm607_vm5, %v2449_v0, %v594_v13  ;;  %v566_v29 = vpop.permute.xlu1 %565  ;;  %v614_v30 = vsel %vm607_vm5, %v2451_v1, %v592_v14  ;;  %v2614_v8 = vrot.slane %v467_v47, %v2601_v3 }
  0xaf   : > { %v2155_v16 = vunpack.i.h.bf16 %v2153_v15  ;;  %v2154_v17 = vunpack.i.l.bf16 %v2153_v15 }
  0xb1   : > { %v548_v22 = vsel %vm547_vm8, %v2154_v17, %v2155_v16  ;;  %v549_v23 = vsel %vm547_vm8, %v542_v7, %v2154_v17  ;;  %v550_v24 = vsel %vm547_vm8, %v2155_v16, %v542_v7  ;;  %v2611_v7 = vrot.slane %v467_v47, %v2598_v61  ;;  %v984_v17 = vld [vmem:[%s3053_s6] sm:$0xf] }
  0xb2   : > { %v617_v26 = vsel %vm607_vm5, %v549_v23, %v601_v19  ;;  %v619_v27 = vsel %vm607_vm5, %v550_v24, %v603_v20  ;;  %v2158_v28 = vpop.permute.xlu0 %2157  ;;  %v618_v2 = vsel %vm607_vm5, %v548_v22, %v602_v18  ;;  %v975_v18 = vld [vmem:[%s3052_s5] sm:$0xf] }
  0xb3   : > { %v2160_v31 = vunpack.i.h.bf16 %v2158_v28  ;;  %v2159_v32 = vunpack.i.l.bf16 %v2158_v28  ;;  %v625_v33 = vpack.c.bf16 %v618_v2, %v615_v21  ;;  %v626_v34 = vpack.c.bf16 %v619_v27, %v616_v25 }
  0xb4   : > { %v624_v35 = vpack.c.bf16 %v617_v26, %v614_v30 }
  0xb5   : > { %v568_v36 = vsel %vm567_vm9, %v2160_v31, %v566_v29  ;;  %v570_v0 = vsel %vm567_vm9, %v566_v29, %v2159_v32  ;;  %646 = vmatprep.subr.bf16.mxu0 %v625_v33  ;;  %2030 = vmatpush3.bf16.msra.mxu1 %v626_v34  ;;  %v569_v37 = vsel %vm567_vm9, %v2159_v32, %v2160_v31 }
  0xb6   : > { %v628_v38 = vpack.c.bf16 %v568_v36, %v568_v36  ;;  %v629_v39 = vpack.c.bf16 %v570_v0, %v570_v0  ;;  %647 = vmatpush1.bf16.msra.mxu0 %v624_v35  ;;  %2031 = vmatprep.subr.bf16.mxu1 %v2310_v4  ;;  %v627_v1 = vpack.c.bf16 %v569_v37, %v569_v37 }
  0xb8   : > { %1996 = vmatprep.subr.msk.bf16.mxu0 %vm634_vm10, %v628_v38  ;;  %v642_v40 = vsel %vm634_vm10, %v629_v39, 0  ;;  %v636_v41 = vsel %vm634_vm10, %v627_v1, 0 }
  0xb9   : > { %2032 = vmatpush3.bf16.msra.mxu1 %v642_v40 }
  0xba   : > { %649 = vmatpush1.bf16.msra.mxu0 %v636_v41  ;;  %2037 = vmatprep.subr.bf16.mxu1 %v2310_v4 }
  0xbc   : > { %2034 = vmatmul.mubr.msk.bf16.vlgmr.msra.gmra.mrb[0].mxu1 %vm630_vm11, %v620_v42 }
  0xbd   : > { %1997 = vmatmul.mubr.msk.bf16.vlgmr.msra.gmra.mrb[0].mxu0 %vm630_vm11, %v620_v42  ;;  %2043 = vmatprep.mubr.msk.bf16.mxu1 %vm2316_vm0, %v2310_v4 }
  0xbe   : > { %923 = vmatprep.mubr.bf16.mxu0 %v2317_v6 }
  0xbf   : > { %v741_v48 = vpop.permute.xlu1 %740 }
  0xc3   : > { %v732_v44 = vpop.permute.xlu0 %731 }
 0x18f   : > { %v719_v46 = vpop.f32.mrb[0].mxu1 }
 0x190   : > { %v727_v49 = vmax.f32 %v719_v46, 0.0  ;;  %v678_v50 = vpop.f32.mrb[0].mxu0  ;;  %v2035_v51 = vpop.f32.mrb[1].mxu1 }
 0x191   : > { %v680_v52 = vpop.f32.mrb[1].mxu0  ;;  %v722_v53 = vpop.f32.mrb[2].mxu1  ;;  %v725_v54 = vmax.f32 %v678_v50, 0.0 }
 0x192   : > { %v736_v55 = vmul.f32 %v732_v44, %v727_v49  ;;  %v726_v56 = vmax.f32 %v680_v52, 0.0  ;;  %v2036_v10 = vpop.f32.mrb[3].mxu1  ;;  %v682_v58 = vpop.f32.mrb[2].mxu0 }
 0x193   : > { %v683_v59 = vpop.f32.mrb[3].mxu0  ;;  %v734_v62 = vmul.f32 %v732_v44, %v725_v54 }
 0x194   : > { %v745_v60 = vadd.f32 %v741_v48, %v736_v55  ;;  %v735_v63 = vmul.f32 %v732_v44, %v726_v56 }
 0x195   : > { %v743_v9 = vadd.f32 %v741_v48, %v734_v62 }
 0x196   : > { %v2604_v5 = vmul.f32 %v745_v60, %v2595_v57  ;;  %v744_v11 = vadd.f32 %v741_v48, %v735_v63 }
 0x197   : > { %v2621_v13 = vmul.f32 %v743_v9, %v2611_v7 }
 0x198   : > { %780 = vrot.lane.b32.xlu0 %v2604_v5, %s3074_s21  ;;  %762 = vrot.lane.b32.xlu1 %v2604_v5, %s3086_s20  ;;  %v2624_v14 = vmul.f32 %v744_v11, %v2614_v8 }
 0x19a   : > { %v2168_v15 = vpack.i.bf16 %v2624_v14, %v2621_v13  ;;  %v2188_v16 = vpack.i.bf16 %v2604_v5, %v2624_v14 }
 0x19c   : > { %771 = vrot.lane.b32.xlu0 %v2604_v5, %s3087_s25  ;;  %753 = vrot.lane.b32.xlu1 %v2604_v5, %s3088_s27 }
 0x1a0   : > { %803 = vrot.lane.b32.xlu0 %v2621_v13, %s3089_s28  ;;  %785 = vrot.lane.b32.xlu1 %v2621_v13, %s3090_s26 }
 0x1a4   : > { %2169 = vrot.lane.b32.xlu0 %v2168_v15, %s3074_s21  ;;  %2164 = vrot.lane.b32.xlu1 %v2168_v15, %s3086_s20 }
 0x1a8   : > { %2179 = vrot.lane.b32.xlu0 %v2168_v15, %s3087_s25  ;;  %2174 = vrot.lane.b32.xlu1 %v2168_v15, %s3088_s27 }
 0x1ac   : > { %2189 = vrot.lane.b32.xlu0 %v2188_v16, %s3089_s28  ;;  %2184 = vrot.lane.b32.xlu1 %v2188_v16, %s3090_s26 }
 0x1b0   : > { %794 = vrot.lane.b32.xlu0 %v2621_v13, %s2315_s18  ;;  %2194 = vrot.lane.b32.xlu1 %v2188_v16, %s2315_s18 }
 0x1b4   : > { %816 = vrot.lane.b32.xlu0 %v2604_v5, %s3091_s0  ;;  %2199 = vrot.lane.b32.xlu1 %v2168_v15, %s3091_s0 }
 0x1b8   : > { %987 = vperm.xlu0 %2161, %v984_v17   ;;  %978 = vperm.xlu1 %2162, %v975_v18  }
 0x20a   : > { %v781_v19 = vpop.permute.xlu0 %780  ;;  %v763_v20 = vpop.permute.xlu1 %762 }
 0x20e   : > { %v772_v21 = vpop.permute.xlu0 %771  ;;  %v754_v22 = vpop.permute.xlu1 %753 }
 0x212   : > { %v804_v23 = vpop.permute.xlu0 %803  ;;  %v786_v24 = vpop.permute.xlu1 %785 }
 0x216   : > { %v2170_v25 = vpop.permute.xlu0 %2169  ;;  %v2165_v26 = vpop.permute.xlu1 %2164 }
 0x217   : > { %v2172_v27 = vunpack.i.h.bf16 %v2170_v25  ;;  %v2171_v28 = vunpack.i.l.bf16 %v2170_v25  ;;  %v2167_v29 = vunpack.i.h.bf16 %v2165_v26  ;;  %v2166_v2 = vunpack.i.l.bf16 %v2165_v26 }
 0x219   : > { %v782_v30 = vsel %vm527_vm2, %v2172_v27, %v781_v19  ;;  %v783_v31 = vsel %vm527_vm2, %v2171_v28, %v2172_v27  ;;  %v784_v32 = vsel %vm527_vm2, %v781_v19, %v2171_v28  ;;  %v764_v34 = vsel %vm507_vm1, %v2167_v29, %v763_v20 }
 0x21a   : > { %v835_v33 = vrot.slane %v782_v30, 4  ;;  %v2180_v35 = vpop.permute.xlu0 %2179  ;;  %v2175_v36 = vpop.permute.xlu1 %2174  ;;  %v765_v0 = vsel %vm507_vm1, %v2166_v2, %v2167_v29  ;;  %v766_v37 = vsel %vm507_vm1, %v763_v20, %v2166_v2  ;;  %v833_v1 = vrot.slane %v784_v32, 4 }
 0x21b   : > { %v2182_v38 = vunpack.i.h.bf16 %v2180_v35  ;;  %v2181_v39 = vunpack.i.l.bf16 %v2180_v35  ;;  %v834_v40 = vrot.slane %v783_v31, 4  ;;  %v2177_v41 = vunpack.i.h.bf16 %v2175_v36 }
 0x21c   : > { %v2176_v42 = vunpack.i.l.bf16 %v2175_v36  ;;  %v826_v44 = vrot.slane %v764_v34, 4  ;;  %v824_v46 = vrot.slane %v766_v37, 4  ;;  %v825_v49 = vrot.slane %v765_v0, 4 }
 0x21d   : > { %v773_v47 = vsel %vm517_vm3, %v2182_v38, %v772_v21  ;;  %v774_v48 = vsel %vm517_vm3, %v2181_v39, %v2182_v38  ;;  %v755_v50 = vsel %vm497_vm4, %v2177_v41, %v754_v22  ;;  %v775_v9 = vsel %vm517_vm3, %v772_v21, %v2181_v39 }
 0x21e   : > { %v756_v51 = vsel %vm497_vm4, %v2176_v42, %v2177_v41  ;;  %v757_v52 = vsel %vm497_vm4, %v754_v22, %v2176_v42  ;;  %v2190_v53 = vpop.permute.xlu0 %2189  ;;  %v2185_v54 = vpop.permute.xlu1 %2184  ;;  %v861_v60 = vsel %vm607_vm5, %v774_v48, %v834_v40  ;;  %v859_v62 = vsel %vm607_vm5, %v755_v50, %v826_v44 }
 0x21f   : > { %v2192_v55 = vunpack.i.h.bf16 %v2190_v53  ;;  %v2191_v56 = vunpack.i.l.bf16 %v2190_v53  ;;  %v2187_v10 = vunpack.i.h.bf16 %v2185_v54  ;;  %v2186_v58 = vunpack.i.l.bf16 %v2185_v54 }
 0x220   : > { %v858_v59 = vsel %vm607_vm5, %v756_v51, %v825_v49  ;;  %v862_v63 = vsel %vm607_vm5, %v773_v47, %v835_v33  ;;  %v857_v16 = vsel %vm607_vm5, %v757_v52, %v824_v46 }
 0x221   : > { %v811_v11 = vsel %vm557_vm7, %v2192_v55, %v804_v23  ;;  %v793_v15 = vsel %vm537_vm6, %v2187_v10, %v786_v24  ;;  %v809_v18 = vsel %vm557_vm7, %v2191_v56, %v2192_v55  ;;  %v810_v19 = vsel %vm557_vm7, %v804_v23, %v2191_v56  ;;  %v869_v55 = vld [vmem:[%s3051_s4] sm:$0x3] }
 0x222   : > { %v853_v17 = vrot.slane %v811_v11, 4  ;;  %v844_v20 = vrot.slane %v793_v15, 4  ;;  %v795_v22 = vpop.permute.xlu0 %794  ;;  %v2195_v25 = vpop.permute.xlu1 %2194  ;;  %v791_v21 = vsel %vm537_vm6, %v2186_v58, %v2187_v10  ;;  %v792_v26 = vsel %vm537_vm6, %v786_v24, %v2186_v58 }
 0x223   : > { %v871_v27 = vpack.c.bf16 %v861_v60, %v858_v59  ;;  %v872_v28 = vpack.c.bf16 %v862_v63, %v859_v62  ;;  %v842_v29 = vrot.slane %v792_v26, 4  ;;  %v843_v2 = vrot.slane %v791_v21, 4 }
 0x224   : > { %v2197_v30 = vunpack.i.h.bf16 %v2195_v25  ;;  %v2196_v31 = vunpack.i.l.bf16 %v2195_v25  ;;  %v851_v32 = vrot.slane %v810_v19, 4  ;;  %v852_v33 = vrot.slane %v809_v18, 4 }
 0x225   : > { %891 = vmatprep.subr.bf16.mxu0 %v871_v27  ;;  %2038 = vmatpush3.bf16.msra.mxu1 %v872_v28  ;;  %v860_v23 = vsel %vm607_vm5, %v775_v9, %v833_v1  ;;  %v865_v34 = vsel %vm607_vm5, %v2604_v5, %v844_v20  ;;  %v864_v1 = vsel %vm607_vm5, %v2624_v14, %v843_v2 }
 0x226   : > { %v802_v35 = vsel %vm547_vm8, %v2197_v30, %v795_v22  ;;  %v800_v24 = vsel %vm547_vm8, %v2196_v31, %v2197_v30  ;;  %v801_v36 = vsel %vm547_vm8, %v795_v22, %v2196_v31  ;;  %v870_v0 = vpack.c.bf16 %v860_v23, %v857_v16  ;;  %v2200_v37 = vpop.permute.xlu1 %2199  ;;  %2039 = vmatprep.subr.bf16.mxu1 %v2310_v4  ;;  %v817_v40 = vpop.permute.xlu0 %816  ;;  %v1126_v30 = vld [vmem:[%s3055_s8] sm:$0xff] }
 0x227   : > { %v2202_v38 = vunpack.i.h.bf16 %v2200_v37  ;;  %v2201_v39 = vunpack.i.l.bf16 %v2200_v37  ;;  %v867_v5 = vsel %vm607_vm5, %v800_v24, %v852_v33  ;;  %v868_v42 = vsel %vm607_vm5, %v802_v35, %v853_v17 }
 0x228   : > { %892 = vmatpush1.bf16.msra.mxu0 %v870_v0  ;;  %v874_v41 = vpack.c.bf16 %v867_v5, %v864_v1  ;;  %v863_v44 = vsel %vm607_vm5, %v2621_v13, %v842_v29  ;;  %v866_v46 = vsel %vm607_vm5, %v801_v36, %v851_v32  ;;  %v875_v48 = vpack.c.bf16 %v868_v42, %v865_v34 }
 0x229   : > { %v818_v47 = vsel %vm567_vm9, %v2202_v38, %v817_v40  ;;  %v873_v49 = vpack.c.bf16 %v866_v46, %v863_v44  ;;  %v820_v14 = vsel %vm567_vm9, %v817_v40, %v2201_v39  ;;  %v819_v52 = vsel %vm567_vm9, %v2201_v39, %v2202_v38 }
 0x22a   : > { %v877_v50 = vpack.c.bf16 %v818_v47, %v818_v47  ;;  %893 = vmatprep.subr.bf16.mxu0 %v874_v41  ;;  %v878_v51 = vpack.c.bf16 %v820_v14, %v820_v14  ;;  %2040 = vmatpush3.bf16.msra.mxu1 %v875_v48  ;;  %v876_v53 = vpack.c.bf16 %v819_v52, %v819_v52 }
 0x22b   : > { %2041 = vmatprep.subr.bf16.mxu1 %v2310_v4 }
 0x22c   : > { %894 = vmatpush1.bf16.msra.mxu0 %v873_v49  ;;  %v889_v13 = vsel %vm634_vm10, %v878_v51, 0  ;;  %v883_v54 = vsel %vm634_vm10, %v876_v53, 0 }
 0x22d   : > { %1999 = vmatprep.subr.msk.bf16.mxu0 %vm634_vm10, %v877_v50 }
 0x22e   : > { %2042 = vmatpush3.bf16.msra.mxu1 %v889_v13 }
 0x22f   : > { %2047 = vmatprep.subr.bf16.mxu1 %v2310_v4 }
 0x230   : > { %896 = vmatpush1.bf16.msra.mxu0 %v883_v54 }
 0x231   : > { %2044 = vmatmul.mubr.msk.bf16.vlgmr.msra.gmra.mrb[4].mxu1 %vm630_vm11, %v869_v55 }
 0x232   : > { %2053 = vmatprep.mubr.msk.bf16.mxu1 %vm2316_vm0, %v2310_v4 }
 0x233   : > { %2000 = vmatmul.mubr.msk.bf16.vlgmr.msra.gmra.mrb[4].mxu0 %vm630_vm11, %v869_v55 }
 0x234   : > { %1176 = vmatprep.mubr.bf16.mxu0 %v2317_v6 }
 0x237   : > { %v979_v56 = vpop.permute.xlu1 %978  ;;  %v988_v18 = vpop.permute.xlu0 %987 }
 0x304   : > { %v966_v10 = vpop.f32.mrb[4].mxu1 }
 0x305   : > { %v974_v58 = vmax.f32 %v966_v10, 0.0  ;;  %v2045_v60 = vpop.f32.mrb[5].mxu1 }
 0x306   : > { %v925_v59 = vpop.f32.mrb[4].mxu0  ;;  %v969_v63 = vpop.f32.mrb[6].mxu1 }
 0x307   : > { %v927_v62 = vpop.f32.mrb[5].mxu0  ;;  %v983_v9 = vmul.f32 %v979_v56, %v974_v58  ;;  %v972_v11 = vmax.f32 %v925_v59, 0.0  ;;  %v2046_v16 = vpop.f32.mrb[7].mxu1 }
 0x308   : > { %v973_v15 = vmax.f32 %v927_v62, 0.0  ;;  %v929_v17 = vpop.f32.mrb[6].mxu0 }
 0x309   : > { %v930_v19 = vpop.f32.mrb[7].mxu0  ;;  %v992_v20 = vadd.f32 %v988_v18, %v983_v9  ;;  %v981_v25 = vmul.f32 %v979_v56, %v972_v11 }
 0x30a   : > { %v982_v6 = vmul.f32 %v979_v56, %v973_v15 }
 0x30b   : > { %v2730_v22 = vmul.f32 %v992_v20, %v2595_v57  ;;  %v990_v21 = vadd.f32 %v988_v18, %v981_v25 }
 0x30c   : > { %v991_v26 = vadd.f32 %v988_v18, %v982_v6 }
 0x30d   : > { %1027 = vrot.lane.b32.xlu0 %v2730_v22, %s3092_s3  ;;  %1009 = vrot.lane.b32.xlu1 %v2730_v22, %s3086_s20  ;;  %v2741_v27 = vmul.f32 %v990_v21, %v2611_v7 }
 0x30e   : > { %v2744_v28 = vmul.f32 %v991_v26, %v2614_v8 }
 0x310   : > { %v2208_v29 = vpack.i.bf16 %v2744_v28, %v2741_v27  ;;  %v2228_v2 = vpack.i.bf16 %v2730_v22, %v2744_v28 }
 0x311   : > { %1018 = vrot.lane.b32.xlu0 %v2730_v22, %s3087_s25  ;;  %1000 = vrot.lane.b32.xlu1 %v2730_v22, %s3088_s27 }
 0x315   : > { %1050 = vrot.lane.b32.xlu0 %v2741_v27, %s3089_s28  ;;  %1032 = vrot.lane.b32.xlu1 %v2741_v27, %s3090_s26 }
 0x319   : > { %2209 = vrot.lane.b32.xlu0 %v2208_v29, %s3092_s3  ;;  %2204 = vrot.lane.b32.xlu1 %v2208_v29, %s3086_s20 }
 0x31d   : > { %2219 = vrot.lane.b32.xlu0 %v2208_v29, %s3087_s25  ;;  %2214 = vrot.lane.b32.xlu1 %v2208_v29, %s3088_s27 }
 0x321   : > { %2229 = vrot.lane.b32.xlu0 %v2228_v2, %s3089_s28  ;;  %2224 = vrot.lane.b32.xlu1 %v2228_v2, %s3090_s26 }
 0x325   : > { %1041 = vrot.lane.b32.xlu0 %v2741_v27, %s2315_s18  ;;  %2234 = vrot.lane.b32.xlu1 %v2228_v2, %s2315_s18  ;;  %s2320_s18 = smov [#allocation2]  }
 0x326   : > { %s2248_s25 = sshll.u32 %s2320_s18, 4  ;;  %s2249_s25 = int_to_ptr.vmem [resolvable:$false] %s2248_s25 }
 0x329   : > { %1063 = vrot.lane.b32.xlu0 %v2730_v22, %s3091_s0  ;;  %2239 = vrot.lane.b32.xlu1 %v2208_v29, %s3091_s0 }
 0x32d   : > { %1129 = vperm.xlu1 %2162, %v1126_v30  }
 0x37f   : > { %v1028_v31 = vpop.permute.xlu0 %1027  ;;  %v1010_v32 = vpop.permute.xlu1 %1009 }
 0x383   : > { %v1019_v33 = vpop.permute.xlu0 %1018  ;;  %v1001_v23 = vpop.permute.xlu1 %1000 }
 0x387   : > { %v1051_v34 = vpop.permute.xlu0 %1050  ;;  %v1033_v35 = vpop.permute.xlu1 %1032 }
 0x38b   : > { %v2210_v24 = vpop.permute.xlu0 %2209  ;;  %v2205_v36 = vpop.permute.xlu1 %2204 }
 0x38c   : > { %v2212_v0 = vunpack.i.h.bf16 %v2210_v24  ;;  %v2211_v37 = vunpack.i.l.bf16 %v2210_v24  ;;  %v2207_v38 = vunpack.i.h.bf16 %v2205_v36  ;;  %v2206_v39 = vunpack.i.l.bf16 %v2205_v36 }
 0x38e   : > { %v1029_v1 = vsel %vm527_vm2, %v2212_v0, %v1028_v31  ;;  %v1030_v5 = vsel %vm527_vm2, %v2211_v37, %v2212_v0  ;;  %v1031_v40 = vsel %vm527_vm2, %v1028_v31, %v2211_v37  ;;  %v1011_v42 = vsel %vm507_vm1, %v2207_v38, %v1010_v32 }
 0x38f   : > { %v1082_v41 = vrot.slane %v1029_v1, 4  ;;  %v2220_v44 = vpop.permute.xlu0 %2219  ;;  %v2215_v46 = vpop.permute.xlu1 %2214  ;;  %v1012_v47 = vsel %vm507_vm1, %v2206_v39, %v2207_v38  ;;  %v1013_v48 = vsel %vm507_vm1, %v1010_v32, %v2206_v39  ;;  %v1080_v50 = vrot.slane %v1031_v40, 4 }
 0x390   : > { %v2222_v49 = vunpack.i.h.bf16 %v2220_v44  ;;  %v2221_v14 = vunpack.i.l.bf16 %v2220_v44  ;;  %v1081_v51 = vrot.slane %v1030_v5, 4  ;;  %v2217_v52 = vunpack.i.h.bf16 %v2215_v46 }
 0x391   : > { %v2216_v53 = vunpack.i.l.bf16 %v2215_v46  ;;  %v1073_v13 = vrot.slane %v1011_v42, 4  ;;  %v1071_v54 = vrot.slane %v1013_v48, 4  ;;  %v1072_v10 = vrot.slane %v1012_v47, 4 }
 0x392   : > { %v1020_v55 = vsel %vm517_vm3, %v2222_v49, %v1019_v33  ;;  %v1021_v56 = vsel %vm517_vm3, %v2221_v14, %v2222_v49  ;;  %v1002_v58 = vsel %vm497_vm4, %v2217_v52, %v1001_v23  ;;  %v1022_v25 = vsel %vm517_vm3, %v1019_v33, %v2221_v14 }
 0x393   : > { %v1003_v59 = vsel %vm497_vm4, %v2216_v53, %v2217_v52  ;;  %v1004_v60 = vsel %vm497_vm4, %v1001_v23, %v2216_v53  ;;  %v2230_v62 = vpop.permute.xlu0 %2229  ;;  %v2225_v63 = vpop.permute.xlu1 %2224  ;;  %v1108_v18 = vsel %vm607_vm5, %v1021_v56, %v1081_v51  ;;  %v1106_v19 = vsel %vm607_vm5, %v1002_v58, %v1073_v13 }
 0x394   : > { %v2232_v9 = vunpack.i.h.bf16 %v2230_v62  ;;  %v2231_v11 = vunpack.i.l.bf16 %v2230_v62  ;;  %v2227_v15 = vunpack.i.h.bf16 %v2225_v63  ;;  %v2226_v16 = vunpack.i.l.bf16 %v2225_v63  ;;  %v1116_v63 = vld [vmem:[%s3054_s7] sm:$0xf] }
 0x395   : > { %v1105_v17 = vsel %vm607_vm5, %v1003_v59, %v1072_v10  ;;  %v1109_v20 = vsel %vm607_vm5, %v1020_v55, %v1082_v41  ;;  %v1104_v26 = vsel %vm607_vm5, %v1004_v60, %v1071_v54  ;;  %vm1509_vm1 = vcmask 1042434  }
 0x396   : > { %v1058_v6 = vsel %vm557_vm7, %v2232_v9, %v1051_v34  ;;  %v1040_v21 = vsel %vm537_vm6, %v2227_v15, %v1033_v35  ;;  %v1056_v2 = vsel %vm557_vm7, %v2231_v11, %v2232_v9  ;;  %v1057_v30 = vsel %vm557_vm7, %v1051_v34, %v2231_v11 }
 0x397   : > { %v1100_v29 = vrot.slane %v1058_v6, 4  ;;  %v1091_v31 = vrot.slane %v1040_v21, 4  ;;  %v1042_v32 = vpop.permute.xlu0 %1041  ;;  %v2235_v23 = vpop.permute.xlu1 %2234  ;;  %v1038_v33 = vsel %vm537_vm6, %v2226_v16, %v2227_v15  ;;  %v1039_v24 = vsel %vm537_vm6, %v1033_v35, %v2226_v16 }
 0x398   : > { %v1118_v36 = vpack.c.bf16 %v1108_v18, %v1105_v17  ;;  %v1119_v0 = vpack.c.bf16 %v1109_v20, %v1106_v19  ;;  %v1089_v37 = vrot.slane %v1039_v24, 4  ;;  %v1090_v38 = vrot.slane %v1038_v33, 4 }
 0x399   : > { %v2237_v39 = vunpack.i.h.bf16 %v2235_v23  ;;  %v2236_v1 = vunpack.i.l.bf16 %v2235_v23  ;;  %v1098_v5 = vrot.slane %v1057_v30, 4  ;;  %v1099_v40 = vrot.slane %v1056_v2, 4 }
 0x39a   : > { %1144 = vmatprep.subr.bf16.mxu0 %v1118_v36  ;;  %2048 = vmatpush3.bf16.msra.mxu1 %v1119_v0  ;;  %v1107_v34 = vsel %vm607_vm5, %v1022_v25, %v1080_v50  ;;  %v1112_v41 = vsel %vm607_vm5, %v2730_v22, %v1091_v31  ;;  %v1111_v14 = vsel %vm607_vm5, %v2744_v28, %v1090_v38  ;;  %v2319_v25 = vmov 1966171168  }
 0x39b   : > { %v1049_v42 = vsel %vm547_vm8, %v2237_v39, %v1042_v32  ;;  %v1047_v35 = vsel %vm547_vm8, %v2236_v1, %v2237_v39  ;;  %v1048_v44 = vsel %vm547_vm8, %v1042_v32, %v2236_v1  ;;  %v1117_v46 = vpack.c.bf16 %v1107_v34, %v1104_v26  ;;  %v2240_v47 = vpop.permute.xlu1 %2239  ;;  %2049 = vmatprep.subr.bf16.mxu1 %v2310_v4  ;;  %v1064_v50 = vpop.permute.xlu0 %1063 }
 0x39c   : > { %v2242_v48 = vunpack.i.h.bf16 %v2240_v47  ;;  %v2241_v49 = vunpack.i.l.bf16 %v2240_v47  ;;  %v1114_v22 = vsel %vm607_vm5, %v1047_v35, %v1099_v40  ;;  %v1115_v52 = vsel %vm607_vm5, %v1049_v42, %v1100_v29 }
 0x39d   : > { %1145 = vmatpush1.bf16.msra.mxu0 %v1117_v46  ;;  %v1121_v51 = vpack.c.bf16 %v1114_v22, %v1111_v14  ;;  %v1110_v53 = vsel %vm607_vm5, %v2741_v27, %v1089_v37  ;;  %v1113_v13 = vsel %vm607_vm5, %v1048_v44, %v1098_v5  ;;  %v1122_v55 = vpack.c.bf16 %v1115_v52, %v1112_v41 }
 0x39e   : > { %v1065_v54 = vsel %vm567_vm9, %v2242_v48, %v1064_v50  ;;  %v1120_v56 = vpack.c.bf16 %v1113_v13, %v1110_v53  ;;  %v1067_v28 = vsel %vm567_vm9, %v1064_v50, %v2241_v49  ;;  %v1066_v59 = vsel %vm567_vm9, %v2241_v49, %v2242_v48 }
 0x39f   : > { %v1124_v10 = vpack.c.bf16 %v1065_v54, %v1065_v54  ;;  %1146 = vmatprep.subr.bf16.mxu0 %v1121_v51  ;;  %v1125_v58 = vpack.c.bf16 %v1067_v28, %v1067_v28  ;;  %2050 = vmatpush3.bf16.msra.mxu1 %v1122_v55  ;;  %v1123_v60 = vpack.c.bf16 %v1066_v59, %v1066_v59  ;;  %v1247_v6 = vunpack.c.l.s4 %v2319_v25 }
 0x3a0   : > { %2051 = vmatprep.subr.bf16.mxu1 %v2310_v4  ;;  %vm1512_vm2 = vcmask 1043459   ;;  %vm1515_vm3 = vcmask 1044484   ;;  %vm1518_vm4 = vcmask 1045509   ;;  %vm1521_vm5 = vcmask 1046534  }
 0x3a1   : > { %1147 = vmatpush1.bf16.msra.mxu0 %v1120_v56  ;;  %v1142_v27 = vsel %vm634_vm10, %v1125_v58, 0  ;;  %v1136_v62 = vsel %vm634_vm10, %v1123_v60, 0  ;;  %v1248_v24 = vunpack.c.0.s8 %v1247_v6  ;;  %vm1524_vm8 = vcmask 1047559  }
 0x3a2   : > { %2002 = vmatprep.subr.msk.bf16.mxu0 %vm634_vm10, %v1124_v10 }
 0x3a3   : > { %2052 = vmatpush3.bf16.msra.mxu1 %v1142_v27  ;;  %v2869_v5 = vsub.s32 %v1248_v24, %v2586_v43 }
 0x3a4   : > { %2062 = vmatprep.subr.mxu1 %v2310_v4 }
 0x3a5   : > { %1149 = vmatpush1.bf16.msra.mxu0 %v1136_v62 }
 0x3a6   : > { %2057 = vmatprep.subr.mxu0 %v2310_v4  ;;  %2054 = vmatmul.mubr.msk.bf16.vlgmr.msra.gmra.mrb[8].mxu1 %vm630_vm11, %v1116_v63 }
 0x3a7   : > { %2064 = vmatprep.mubr.msk.f32.mxu1 %vm2316_vm0, %v2310_v4 }
 0x3a8   : > { %2003 = vmatmul.mubr.msk.bf16.vlgmr.msra.gmra.mrb[8].mxu0 %vm630_vm11, %v1116_v63  ;;  %vm1527_vm11 = vcmask 64512  }
 0x3a9   : > { %2059 = vmatprep.mubr.msk.f32.mxu0 %vm2316_vm0, %v2310_v4  ;;  %vm1506_vm0 = vcmask 1041409  }
 0x3ac   : > { %v1130_v9 = vpop.permute.xlu1 %1129 }
 0x479   : > { %v1219_v11 = vpop.f32.mrb[8].mxu1 }
 0x47a   : > { %v2848_v15 = vadd.f32 %v1219_v11, %v1130_v9  ;;  %v2055_v17 = vpop.f32.mrb[9].mxu1 }
 0x47b   : > { %v1178_v16 = vpop.f32.mrb[8].mxu0  ;;  %v1222_v20 = vpop.f32.mrb[10].mxu1 }
 0x47c   : > { %v2850_v18 = vadd.f32 %v1178_v16, %v1130_v9  ;;  %v1180_v19 = vpop.f32.mrb[9].mxu0  ;;  %v1227_v21 = vmax.f32 %v2848_v15, 0.0  ;;  %v2056_v2 = vpop.f32.mrb[11].mxu1 }
 0x47d   : > { %v2853_v26 = vadd.f32 %v1180_v19, %v1130_v9  ;;  %v1182_v29 = vpop.f32.mrb[10].mxu0 }
 0x47e   : > { %v1225_v30 = vmax.f32 %v2850_v18, 0.0  ;;  %v1183_v31 = vpop.f32.mrb[11].mxu0  ;;  %v1230_v32 = vsub.f32 %v1227_v21, %v1130_v9 }
 0x47f   : > { %v1226_v23 = vmax.f32 %v2853_v26, 0.0 }
 0x480   : > { %v1228_v33 = vsub.f32 %v1225_v30, %v1130_v9  ;;  %vm1233_vm12 = vcmp.gt.f32.partialorder %v1230_v32, 0.0 }
 0x481   : > { %v1229_v36 = vsub.f32 %v1226_v23, %v1130_v9  ;;  %v1236_v0 = vsel %vm1233_vm12, 1.0, %v2310_v4  ;;  %vm1603_vm12 = vcmask 15360  }
 0x482   : > { %vm1231_vm13 = vcmp.gt.f32.partialorder %v1228_v33, 0.0  ;;  %v1239_v37 = vmul.f32 %v1236_v0, %v2595_v57 }
 0x483   : > { %v1234_v38 = vsel %vm1231_vm13, 1.0, %v2310_v4  ;;  %vm1232_vm14 = vcmp.gt.f32.partialorder %v1229_v36, 0.0 }
 0x484   : > { %v1237_v39 = vmul.f32 %v1234_v38, %v2611_v7  ;;  %v1235_v1 = vsel %vm1232_vm14, 1.0, %v2310_v4  ;;  %v1245_v40 = vcombine.high %v1239_v37, %v1239_v37  ;;  %v1266_v35 = vrot.slane %v1239_v37, %v2869_v5 }
 0x485   : > { %v1238_v34 = vmul.f32 %v1235_v1, %v2614_v8 }
 0x486   : > { %v1273_v44 = vrot.slane %v1245_v40, %v2869_v5 }
 0x487   : > { %v1243_v41 = vcombine.low %v1237_v39, %v1238_v34  ;;  %v1244_v42 = vcombine.high %v1237_v39, %v1238_v34 }
 0x489   : > { %v1252_v57 = vrot.slane %v1243_v41, %v2869_v5  ;;  %v1259_v46 = vrot.slane %v1244_v42, %v2869_v5 }
 0x48b   : > { %v1274_v47 = vcombine.low %v1252_v57, %v1266_v35  ;;  %v1275_v7 = vcombine.high %v1252_v57, %v1266_v35  ;;  %v1276_v48 = vcombine.low %v1259_v46, %v1273_v44  ;;  %v1277_v4 = vcombine.high %v1259_v46, %v1273_v44 }
 0x48d   : > { %v1291_v43 = vrot.slane %v1276_v48, %v2869_v5  ;;  %v1298_v49 = vrot.slane %v1275_v7, %v2869_v5  ;;  %v1284_v8 = vrot.slane %v1274_v47, %v2869_v5  ;;  %v1305_v14 = vrot.slane %v1277_v4, %v2869_v5 }
 0x48f   : > { %v1361_v22 = vrot.slane %v1291_v43, %v2598_v61  ;;  %v1365_v50 = vrot.slane %v1291_v43, %v2601_v3  ;;  %v1369_v51 = vrot.slane %v1291_v43, %v2589_v45  ;;  %v1325_v52 = vrot.slane %v1298_v49, %v2598_v61 }
 0x490   : > { %v1329_v53 = vrot.slane %v1298_v49, %v2601_v3  ;;  %v1333_v13 = vrot.slane %v1298_v49, %v2589_v45  ;;  %v1313_v54 = vrot.slane %v1284_v8, %v2598_v61  ;;  %v1317_v55 = vrot.slane %v1284_v8, %v2601_v3 }
 0x491   : > { %v1459_v56 = vsel %vm1430_vm15, %v1361_v22, 0.0  ;;  %v1460_v28 = vsel %vm1430_vm15, %v1365_v50, 0.0  ;;  %v1462_v10 = vsel %vm1430_vm15, %v1369_v51, 0.0  ;;  %v1438_v58 = vsel %vm1430_vm15, %v1325_v52, 0.0 }
 0x492   : > { %v1461_v59 = vadd.f32 %v1460_v28, %v1459_v56  ;;  %v1439_v60 = vsel %vm1430_vm15, %v1329_v53, 0.0  ;;  %v1441_v27 = vsel %vm1430_vm15, %v1333_v13, 0.0  ;;  %v1321_v62 = vrot.slane %v1284_v8, %v2589_v45 }
 0x493   : > { %v1440_v63 = vadd.f32 %v1439_v60, %v1438_v58  ;;  %v1431_v9 = vsel %vm1430_vm15, %v1313_v54, 0.0  ;;  %v1432_v11 = vsel %vm1430_vm15, %v1317_v55, 0.0  ;;  %v1306_v16 = vcombine.high %v1284_v8, %v1284_v8 }
 0x494   : > { %v1463_v17 = vadd.f32 %v1462_v10, %v1461_v59  ;;  %v1433_v19 = vadd.f32 %v1432_v11, %v1431_v9  ;;  %v1434_v20 = vsel %vm1430_vm15, %v1321_v62, 0.0  ;;  %v1373_v25 = vrot.slane %v1305_v14, %v2598_v61 }
 0x495   : > { %v1442_v6 = vadd.f32 %v1441_v27, %v1440_v63  ;;  %v1337_v29 = vrot.slane %v1306_v16, %v2598_v61  ;;  %v1341_v2 = vrot.slane %v1306_v16, %v2601_v3  ;;  %v1345_v31 = vrot.slane %v1306_v16, %v2589_v45 }
 0x496   : > { %1464 = vadd.xlane.f32.xlu1 %v1463_v17  ;;  %v1435_v32 = vadd.f32 %v1434_v20, %v1433_v19  ;;  %v1377_v33 = vrot.slane %v1305_v14, %v2601_v3  ;;  %v1466_v24 = vsel %vm1430_vm15, %v1373_v25, 0.0  ;;  %v1381_v37 = vrot.slane %v1305_v14, %v2589_v45 }
 0x497   : > { %1443 = vadd.xlane.f32.xlu0 %v1442_v6  ;;  %v1445_v36 = vsel %vm1430_vm15, %v1337_v29, 0.0  ;;  %v1446_v0 = vsel %vm1430_vm15, %v1341_v2, 0.0  ;;  %v1307_v38 = vcombine.high %v1291_v43, %v1291_v43  ;;  %v1448_v1 = vsel %vm1430_vm15, %v1345_v31, 0.0 }
 0x498   : > { %v1447_v39 = vadd.f32 %v1446_v0, %v1445_v36  ;;  %v1467_v40 = vsel %vm1430_vm15, %v1377_v33, 0.0  ;;  %v1308_v34 = vcombine.high %v1298_v49, %v1298_v49  ;;  %v1469_v7 = vsel %vm1430_vm15, %v1381_v37, 0.0 }
 0x499   : > { %v1468_v41 = vadd.f32 %v1467_v40, %v1466_v24  ;;  %v1385_v42 = vrot.slane %v1307_v38, %v2598_v61  ;;  %v1389_v35 = vrot.slane %v1307_v38, %v2601_v3  ;;  %v1393_v44 = vrot.slane %v1307_v38, %v2589_v45 }
 0x49a   : > { %v1449_v57 = vadd.f32 %v1448_v1, %v1447_v39  ;;  %v1349_v46 = vrot.slane %v1308_v34, %v2598_v61  ;;  %v1353_v47 = vrot.slane %v1308_v34, %v2601_v3  ;;  %v1357_v49 = vrot.slane %v1308_v34, %v2589_v45 }
 0x49b   : > { %1436 = vadd.xlane.f32.xlu0 %v1435_v32  ;;  %v1473_v48 = vsel %vm1430_vm15, %v1385_v42, 0.0  ;;  %v1474_v4 = vsel %vm1430_vm15, %v1389_v35, 0.0  ;;  %v1470_v50 = vadd.f32 %v1469_v7, %v1468_v41  ;;  %v1476_v51 = vsel %vm1430_vm15, %v1393_v44, 0.0  ;;  %v1495_v44 = vld [vmem:[%s3056_s9] sm:$0x3] }
 0x49c   : > { %1450 = vadd.xlane.f32.xlu1 %v1449_v57  ;;  %v1475_v43 = vadd.f32 %v1474_v4, %v1473_v48  ;;  %v1452_v8 = vsel %vm1430_vm15, %v1349_v46, 0.0  ;;  %v1453_v22 = vsel %vm1430_vm15, %v1353_v47, 0.0  ;;  %v1309_v53 = vcombine.high %v1305_v14, %v1305_v14  ;;  %v1496_v46 = vld [vmem:[%s3057_s10] sm:$0x3] }
 0x49d   : > { %v1454_v52 = vadd.f32 %v1453_v22, %v1452_v8  ;;  %v1455_v56 = vsel %vm1430_vm15, %v1357_v49, 0.0  ;;  %v1601_v4 = vld [vmem:[%s3058_s11] sm:$0xff] }
 0x49e   : > { %v1477_v13 = vadd.f32 %v1476_v51, %v1475_v43  ;;  %v1397_v54 = vrot.slane %v1309_v53, %v2598_v61  ;;  %v1401_v55 = vrot.slane %v1309_v53, %v2601_v3  ;;  %v1405_v28 = vrot.slane %v1309_v53, %v2589_v45  ;;  %v1602_v43 = vld [vmem:[%s3059_s12] sm:$0xff] }
 0x49f   : > { %1471 = vadd.xlane.f32.xlu0 %v1470_v50  ;;  %v1456_v10 = vadd.f32 %v1455_v56, %v1454_v52 }
 0x4a0   : > { %1478 = vadd.xlane.f32.xlu1 %v1477_v13  ;;  %v1480_v58 = vsel %vm1430_vm15, %v1397_v54, 0.0  ;;  %v1481_v59 = vsel %vm1430_vm15, %v1401_v55, 0.0  ;;  %v1483_v14 = vsel %vm1430_vm15, %v1405_v28, 0.0 }
 0x4a1   : > { %v1482_v60 = vadd.f32 %v1481_v59, %v1480_v58 }
 0x4a3   : > { %1457 = vadd.xlane.f32.xlu0 %v1456_v10  ;;  %v1484_v27 = vadd.f32 %v1483_v14, %v1482_v60 }
 0x4a7   : > { %1485 = vadd.xlane.f32.xlu0 %v1484_v27 }
 0x523   : > { %v1465_v62 = vpop.xlane.xlu1 %1464 }
 0x524   : > { %v1444_v63 = vpop.xlane.xlu0 %1443  ;;  %v1491_v25 = vmul.f32 0.00390625, %v1465_v62 }
 0x525   : > { %v1488_v11 = vmul.f32 0.00390625, %v1444_v63 }
 0x526   : > { %v1514_v36 = vrot.slane %v1491_v25, 4 }
 0x527   : > { %v1505_v45 = vrot.slane %v1488_v11, 7 }
 0x528   : > { %v1437_v9 = vpop.xlane.xlu0 %1436 }
 0x529   : > { %v1451_v3 = vpop.xlane.xlu1 %1450  ;;  %v1487_v19 = vmul.f32 0.00390625, %v1437_v9 }
 0x52a   : > { %v1489_v16 = vmul.f32 0.00390625, %v1451_v3 }
 0x52b   : > { %v1507_v2 = vsel %vm1506_vm0, %v1505_v45, %v1487_v19 }
 0x52c   : > { %v1472_v17 = vpop.xlane.xlu0 %1471  ;;  %v1508_v6 = vrot.slane %v1489_v16, 6 }
 0x52d   : > { %v1479_v20 = vpop.xlane.xlu1 %1478  ;;  %v1492_v31 = vmul.f32 0.00390625, %v1472_v17 }
 0x52e   : > { %v1493_v33 = vmul.f32 0.00390625, %v1479_v20  ;;  %v1510_v0 = vsel %vm1509_vm1, %v1508_v6, %v1507_v2 }
 0x52f   : > { %v1517_v38 = vrot.slane %v1492_v31, 3 }
 0x530   : > { %v1458_v29 = vpop.xlane.xlu0 %1457  ;;  %v1520_v40 = vrot.slane %v1493_v33, 2 }
 0x531   : > { %v1490_v32 = vmul.f32 0.00390625, %v1458_v29 }
 0x533   : > { %v1511_v24 = vrot.slane %v1490_v32, 5 }
 0x534   : > { %v1486_v37 = vpop.xlane.xlu0 %1485 }
 0x535   : > { %v1513_v39 = vsel %vm1512_vm2, %v1511_v24, %v1510_v0  ;;  %v1494_v1 = vmul.f32 0.00390625, %v1486_v37 }
 0x536   : > { %v1516_v34 = vsel %vm1515_vm3, %v1514_v36, %v1513_v39 }
 0x537   : > { %v1523_v41 = vrot.slane %v1494_v1, 1  ;;  %v1519_v42 = vsel %vm1518_vm4, %v1517_v38, %v1516_v34 }
 0x538   : > { %v1522_v35 = vsel %vm1521_vm5, %v1520_v40, %v1519_v42 }
 0x539   : > { %v1525_v57 = vsel %vm1524_vm8, %v1523_v41, %v1522_v35 }
 0x53a   : > { %2058 = vmatpush3.msra.mxu0 %v1525_v57 }
 0x53b   : > { %2060 = vmatmul.mubr.msk.f32.vlgmr.msra.gmra.mrb[12].mxu0 %vm1527_vm11, %v1495_v44 }
 0x60e   : > { %v1597_v47 = vpop.f32.mrb[12].mxu0 }
 0x60f   : > { %v1598_v7 = vadd.f32 %v1597_v47, %v1496_v46  ;;  %v2061_v48 = vpop.f32.mrb[13].mxu0 }
 0x611   : > { %2063 = vmatpush3.msk.msra.mxu1 %vm634_vm10, %v1598_v7 }
 0x612   : > { %2065 = vmatmul.mubr.msk.f32.vlgmr.msra.gmra.mrb[12].mxu1 %vm1603_vm12, %v1601_v4 }
 0x6e5   : > { %v1676_v49 = vpop.f32.mrb[12].mxu1 }
 0x6e6   : > { %v1677_v8 = vadd.f32 %v1676_v49, %v1602_v43  ;;  %v2066_v22 = vpop.f32.mrb[13].mxu1 }
 0x6e8   : > { %v1681_v50 = vcombine.high %v1677_v8, %v1677_v8  ;;  %v1688_v51 = vrot.slane %v1677_v8, %v2869_v5 }
 0x6ea   : > { %v1696_v52 = vcombine.high %v1688_v51, %v1688_v51  ;;  %v1704_v53 = vrot.slane %v1688_v51, %v2869_v5  ;;  %v1695_v13 = vrot.slane %v1681_v50, %v2869_v5 }
 0x6ec   : > { %1731 = vperm.xlu1 %2162, %v1704_v53   ;;  %v1718_v54 = vrot.slane %v1696_v52, %v2869_v5  ;;  %v1726_v55 = vcombine.high %v1704_v53, %v1704_v53  ;;  %v1711_v56 = vrot.slane %v1695_v13, %v2869_v5  ;;  %v1697_v10 = vcombine.high %v1695_v13, %v1695_v13 }
 0x6ee   : > { %1739 = vperm.xlu0 %2161, %v1718_v54   ;;  %v1728_v28 = vcombine.high %v1718_v54, %v1718_v54  ;;  %v1727_v58 = vcombine.high %v1711_v56, %v1711_v56  ;;  %v1725_v59 = vrot.slane %v1697_v10, %v2869_v5 }
 0x6f0   : > { %1747 = vperm.xlu1 %2162, %v1726_v55   ;;  %v1729_v60 = vcombine.high %v1725_v59, %v1725_v59 }
 0x6f2   : > { %1763 = vperm.xlu0 %2161, %v1711_v56  }
 0x6f4   : > { %1755 = vperm.xlu1 %2162, %v1728_v28  }
 0x6f6   : > { %1779 = vperm.xlu0 %2161, %v1727_v58  }
 0x6f8   : > { %1771 = vperm.xlu1 %2162, %v1725_v59  }
 0x6fc   : > { %1787 = vperm.xlu1 %2162, %v1729_v60  }
 0x76b   : > { %v1732_v14 = vpop.permute.xlu1 %1731 }
 0x76c   : > { %v1737_v19 = vrot.slane %v1732_v14, %v2598_v61 }
 0x76d   : > { %v1740_v27 = vpop.permute.xlu0 %1739 }
 0x76e   : > { %v1745_v11 = vrot.slane %v1740_v27, %v2598_v61 }
 0x76f   : > { %v1748_v62 = vpop.permute.xlu1 %1747 }
 0x770   : > { %v1753_v16 = vrot.slane %v1748_v62, %v2598_v61  ;;  %v1802_v6 = vcombine.low %v1737_v19, %v1745_v11 }
 0x771   : > { %v1764_v63 = vpop.permute.xlu0 %1763 }
 0x772   : > { %v1769_v29 = vrot.slane %v1764_v63, %v2598_v61  ;;  %v1812_v36 = vrot.slane %v1802_v6, %v2869_v5 }
 0x773   : > { %v1756_v9 = vpop.permute.xlu1 %1755 }
 0x774   : > { %v1761_v3 = vrot.slane %v1756_v9, %v2598_v61 }
 0x775   : > { %v1780_v25 = vpop.permute.xlu0 %1779 }
 0x776   : > { %v1803_v45 = vcombine.low %v1753_v16, %v1761_v3  ;;  %v1785_v32 = vrot.slane %v1780_v25, %v2598_v61 }
 0x777   : > { %v1772_v17 = vpop.permute.xlu1 %1771 }
 0x778   : > { %v1777_v20 = vrot.slane %v1772_v17, %v2598_v61  ;;  %v1819_v31 = vrot.slane %v1803_v45, %v2869_v5 }
 0x77a   : > { %v1804_v33 = vcombine.low %v1769_v29, %v1777_v20  ;;  %v1834_v37 = vcombine.low %v1812_v36, %v1819_v31  ;;  %v1835_v38 = vcombine.high %v1812_v36, %v1819_v31 }
 0x77b   : > { %v1788_v2 = vpop.permute.xlu1 %1787 }
 0x77c   : > { %v1793_v24 = vrot.slane %v1788_v2, %v2598_v61  ;;  %v1826_v39 = vrot.slane %v1804_v33, %v2869_v5  ;;  %v1844_v41 = vrot.slane %v1834_v37, %v2869_v5  ;;  %v1851_v42 = vrot.slane %v1835_v38, %v2869_v5 }
 0x77e   : > { %v1805_v0 = vcombine.low %v1785_v32, %v1793_v24 }
 0x780   : > { %v1833_v1 = vrot.slane %v1805_v0, %v2869_v5 }
 0x782   : > { %v1836_v40 = vcombine.low %v1826_v39, %v1833_v1  ;;  %v1837_v34 = vcombine.high %v1826_v39, %v1833_v1 }
 0x784   : > { %v1858_v35 = vrot.slane %v1836_v40, %v2869_v5  ;;  %v1865_v44 = vrot.slane %v1837_v34, %v2869_v5 }
 0x786   : > { %v1868_v61 = vcombine.low %v1851_v42, %v1865_v44  ;;  %v1866_v57 = vcombine.low %v1844_v41, %v1858_v35  ;;  %v1867_v7 = vcombine.high %v1844_v41, %v1858_v35 }
 0x788   : > { %v1873_v46 = vmul.f32 %v1868_v61, %v1226_v23  ;;  %v1872_v47 = vmul.f32 %v1866_v57, %v1225_v30  ;;  %v1874_v48 = vmul.f32 %v1867_v7, %v1227_v21 }
 0x78a   : > { %1877 = vrot.lane.b32.xlu1 %v1873_v46, %s3090_s26  ;;  %1875 = vrot.lane.b32.xlu0 %v1872_v47, %s3090_s26 }
 0x78e   : > { %1887 = vrot.lane.b32.xlu1 %v1872_v47, %s3089_s28  ;;  %1879 = vrot.lane.b32.xlu0 %v1874_v48, %s3090_s26  ;;  %s458_s26 = sand.u32 1, %s2298_s30  }
 0x792   : > { %1891 = vrot.lane.b32.xlu1 %v1874_v48, %s3089_s28  ;;  %1889 = vrot.lane.b32.xlu0 %v1873_v46, %s3089_s28  ;;  %s2069_s28 = smul.u32 384, %s2417_s17  ;;  %s1918_s17 = scalar_lea.sflag [#allocation3], %s458_s26 }
 0x794   : > { %s3003_s21 = scalar_lea.hbm %s3061_s14, %s2069_s28 }
 0x796   : > { %1901 = vrot.lane.b32.xlu1 %v1873_v46, %s3091_s0  ;;  %1899 = vrot.lane.b32.xlu0 %v1872_v47, %s3091_s0 }
 0x79a   : > { %1903 = vrot.lane.b32.xlu0 %v1874_v48, %s3091_s0  ;;  %s2067_s0 = smul.u32 24, %s458_s26 }
 0x79c   : > { %s460_s27 = scalar_lea.vmem [#allocation2], %s2067_s0  ;;  %s2250_s0 = scalar_lea.vmem %s2249_s25, 768 }
 0x79d   : > { %s1932_s1 = sshll.u32 %s460_s27, 4  ;;  %s3005_s1 = int_to_ptr.vmem [resolvable:$true] %s1932_s1 }
 0x79e   : > { %s2244_s20 = scalar_lea.vmem %s3005_s1, 384  ;;  %p2251_p0 = scmp.lt.s32.totalorder %s3005_s1, %s2249_s25 }
 0x79f   : > { %p2245_p11 = scmp.ne.s32.totalorder %s3005_s1, %s2244_s20  ;;  %p2252_p1 = scmp.lt.s32.totalorder %s2250_s0, %s2244_s20 }
 0x7a1   : > { %p2246_p12 = pnand %p2245_p11, %p2434_p5  ;;  %p2253_p2 = por %p2252_p1, %p2251_p0 }
 0x7a3   : > { %p2247_p13 = pneg %p2246_p12 }
 0x7a5   : > { %p2254_p3 = pnand %p2253_p2, %p2247_p13 }
 0x7fc   : > { %v1878_v18 = vpop.permute.xlu1 %1877  ;;  %v1876_v26 = vpop.permute.xlu0 %1875 }
 0x7fd   : > { %v1882_v21 = vsel %vm537_vm6, %v1876_v26, %v1878_v18 }
 0x7fe   : > { %v1884_v43 = vadd.f32 %v1882_v21, %v1872_v47 }
 0x800   : > { %v1888_v15 = vpop.permute.xlu1 %1887  ;;  %v1880_v30 = vpop.permute.xlu0 %1879 }
 0x801   : > { %v1881_v49 = vsel %vm537_vm6, %v1878_v18, %v1880_v30  ;;  %v1883_v8 = vsel %vm537_vm6, %v1880_v30, %v1876_v26 }
 0x802   : > { %v1885_v54 = vadd.f32 %v1881_v49, %v1873_v46  ;;  %v1886_v55 = vadd.f32 %v1883_v8, %v1874_v48 }
 0x804   : > { %v1892_v23 = vpop.permute.xlu1 %1891  ;;  %v1890_v5 = vpop.permute.xlu0 %1889 }
 0x805   : > { %v1894_v4 = vsel %vm557_vm7, %v1888_v15, %v1890_v5  ;;  %v1895_v52 = vsel %vm557_vm7, %v1892_v23, %v1888_v15  ;;  %v1893_v53 = vsel %vm557_vm7, %v1890_v5, %v1892_v23 }
 0x806   : > { %v1896_v22 = vadd.f32 %v1894_v4, %v1884_v43  ;;  %v1898_v28 = vadd.f32 %v1895_v52, %v1886_v55  ;;  %v1897_v10 = vadd.f32 %v1893_v53, %v1885_v54 }
 0x808   : > { %v1902_v50 = vpop.permute.xlu1 %1901  ;;  %v1900_v51 = vpop.permute.xlu0 %1899 }
 0x809   : > { %v1906_v13 = vsel %vm567_vm9, %v1900_v51, %v1902_v50 }
 0x80a   : > { %v1908_v56 = vadd.f32 %v1906_v13, %v1896_v22 }
 0x80c   : > { %v1911_v58 = vmul.f32 0.25, %v1908_v56  ;;  %v1904_v59 = vpop.permute.xlu0 %1903 }
 0x80d   : > { %v1905_v60 = vsel %vm567_vm9, %v1902_v50, %v1904_v59  ;;  %v1907_v14 = vsel %vm567_vm9, %v1904_v59, %v1900_v51 }
 0x80e   : > { %1914 = vst [vmem:[%s460_s27] sm:$0xff] %v1911_v58  ;;  %v1909_v27 = vadd.f32 %v1905_v60, %v1897_v10  ;;  %v1910_v62 = vadd.f32 %v1907_v14, %v1898_v28 }
 0x810   : > { %v1912_v63 = vmul.f32 0.25, %v1909_v27  ;;  %v1913_v9 = vmul.f32 0.25, %v1910_v62 }
 0x812   : > { %1915 = vst [vmem:[%s460_s27 + $0x8] sm:$0xff] %v1912_v63  ;;  %1916 = vst [vmem:[%s460_s27 + $0x10] sm:$0xff] %v1913_v9 }
 0x813   : > { %2257 = shalt.err (!%p2254_p3)
}
 0x814   : > { %s2258_s26 = scalar_lea.hbm %s3003_s21, 384  ;;  %s2262_s2 = scalar_lea.hbm %s3061_s14, 768 }
 0x815   : > { %p2259_p4 = scmp.ne.s32.totalorder %s3003_s21, %s2258_s26  ;;  %p2263_p9 = scmp.lt.u32.totalorder %s3003_s21, %s3061_s14 }
 0x816   : > { %p2264_p10 = scmp.lt.u32.totalorder %s2262_s2, %s2258_s26  ;;  %p2266_p12 = scmp.lt.u32.totalorder %s2258_s26, %s3003_s21 }
 0x817   : > { %p2260_p7 = pnand %p2259_p4, %p2434_p5 }
 0x818   : > { %p2265_p11 = por %p2264_p10, %p2263_p9 }
 0x819   : > { %p2261_p8 = pneg %p2260_p7 }
 0x81a   : > { %p2267_p13 = por %p2266_p12, %p2265_p11 }
 0x81c   : > { %p2268_p0 = pnand %p2267_p13, %p2261_p8 }
 0x81e   : > { %2271 = shalt.err (!%p2268_p0)
}
 0x81f   : > { %2070 = dma.vmem_to_hbm [thread:$0]  (%p2434_p5), %s3005_s1, 384, %s3003_s21, %s1918_s17  }
 0x820 PF: > { %p2076_p1 = scmp.ge.s32.totalorder %s2306_s16, 2  ;;  %s1944_s20 = sand.u32 1, %s2294_s29  }
 0x821   : > { %s1945_s25 = scalar_lea.sflag [#allocation3], %s1944_s20 }
 0x822   : > { %p2073_p2 = pnand %p2076_p1, %p2438_p6 }
 0x824   : > { %2289 = dma.done.wait (!%p2073_p2), %s1945_s25, 384  }
 0x825   : > { %2291 = vsyncadd (!%p2073_p2), %s1945_s25, 4294966912  ;;  %p24_p3 = scmp.ge.s32.totalorder %s2421_s19, 4   ;;  %s3093_s29 = smov %s2298_s30 }
 0x826   : > { %s3094_s30 = smov %s2302_s15  ;;  %s3095_s15 = smov %s2432_s22 }
 0x827   : > { %s3096_s16 = smov %s2421_s19  ;;  %26 = sbr.rel (!%p24_p3) target bundleno = 8 (0x8), region = 111 }
 0x82e   :  { %1950 = vsyncpa [#allocation3], 1 }
 0x82f   :  { %1952 = vsyncpa [#allocation3 + $0x1], 1 }

</bundles_post_ra>
